<compile_context>
chip_gen: v7x
topology: tpu7x:2x2x1
jax: 0.10.0
libtpu: 0.0.40
codegen_flags: <defaults>
</compile_context>

<pallas_src>
import functools

import jax
import jax.numpy as jnp
from jax.experimental import pallas as pl
from jax.experimental.pallas import tpu as pltpu

# ---------------- model hyper-parameters (small, consistent with the module) ----------------
BATCH = 2
SEQ = 8
INPUT_SIZE = 4
HIDDEN = 32
NUM_LAYERS = 2          # fixed to 2 in this kernel
OUTPUT_SIZE = 3
# TODO(synk): dropout (p=0.2) is a no-op in eval mode; training-mode dropout not implemented.


def hybrid_kernel(
    x_ref,                 # (T*B, Din)   time-major flat input
    sel_ref,               # (B, T*B)     batch-selector matrix (constant)
    wih0_ref, whh0_ref, b0_ref,
    wih1_ref, whh1_ref, b1_ref,
    wa1_ref, ba1_ref, wa2_ref, ba2_ref,
    wf1_ref, bf1_ref, wf2_ref, bf2_ref,
    out_ref,               # (B, OUT)
    seq0_ref, seq1_ref,    # (T*B, H) scratch slabs
    *, seq_len, batch,
):
    T, B = seq_len, batch
    H = whh0_ref.shape[0]
    f32 = jnp.float32

    def run_layer(gates_in, whh, seq_ref):
        """Recurrence only: gates_in already holds x@w_ih + b for every timestep."""
        h = jnp.zeros((B, H), f32)
        c = jnp.zeros((B, H), f32)
        for t in range(T):           # short static unroll; only h@whh is on the serial chain
            g = gates_in[t * B:(t + 1) * B, :] + jnp.dot(
                h, whh, preferred_element_type=f32)
            # gate columns pre-permuted to [i, f, o, g]
            sg = jax.nn.sigmoid(g[:, :3 * H])       # i | f | o in one transcendental issue
            gg = jnp.tanh(g[:, 3 * H:])             # g
            c = sg[:, H:2 * H] * c + sg[:, :H] * gg
            h = sg[:, 2 * H:3 * H] * jnp.tanh(c)
            seq_ref[t * B:(t + 1) * B, :] = h

    # ----------------- layer 0: hoisted input projection (ONE matmul) + recurrence ----------
    gi0 = jnp.dot(x_ref[...], wih0_ref[...], preferred_element_type=f32) + b0_ref[...]
    run_layer(gi0, whh0_ref[...], seq0_ref)

    # ----------------- layer 1: hoisted input projection (ONE matmul) + recurrence ----------
    gi1 = jnp.dot(seq0_ref[...], wih1_ref[...], preferred_element_type=f32) + b1_ref[...]
    run_layer(gi1, whh1_ref[...], seq1_ref)

    seq1 = seq1_ref[...]                                   # (T*B, H), time-major

    # ------------------------- attention: batched scoring over all (t, b) -------------------
    a = jnp.tanh(jnp.dot(seq1, wa1_ref[...], preferred_element_type=f32) + ba1_ref[...])
    # Linear(H, 1) as broadcast multiply + lane reduction (avoids an N=1 matmul).
    s = jnp.sum(a * wa2_ref[...], axis=-1, keepdims=True) + ba2_ref[...]   # (T*B, 1)

    # Softmax over T per batch. Shifting by the global max is valid (constant per batch)
    # and keeps exp arguments <= 0 for stability.
    e = jnp.exp(s - jnp.max(s, axis=0, keepdims=True))                     # (T*B, 1)

    sel = sel_ref[...]                                                     # (B, T*B)
    ctx_un = jnp.dot(sel, e * seq1, preferred_element_type=f32)            # (B, H) weighted sum
    denom = jnp.dot(sel, e, preferred_element_type=f32)                    # (B, 1) softmax denom
    context = ctx_un * pl.reciprocal(denom, approx=True)                   # (B, H)

    # ----------------------------------- MLP head --------------------------------------------
    h1 = jnp.maximum(
        jnp.dot(context, wf1_ref[...], preferred_element_type=f32) + bf1_ref[...], 0.0)
    out_ref[...] = jnp.dot(h1, wf2_ref[...], preferred_element_type=f32) + bf2_ref[...]


@jax.jit
def hybrid_forward(x, params):
    """x: (B, T, Din) batch-first, like the PyTorch module."""
    B, T, Din = x.shape
    # Time-major flat layout (row = t*B + b); computed in XLA, free relative to the kernel.
    x_flat = jnp.transpose(x, (1, 0, 2)).reshape(T * B, Din)
    # sel[b, j] = 1 iff row j of the flat slab belongs to batch b (j % B == b).
    sel = (jnp.arange(T * B, dtype=jnp.int32)[None, :] % B
           == jnp.arange(B, dtype=jnp.int32)[:, None]).astype(jnp.float32)

    vmem = pl.BlockSpec(memory_space=pltpu.MemorySpace.VMEM)
    kernel = functools.partial(hybrid_kernel, seq_len=T, batch=B)
    return pl.pallas_call(
        kernel,
        out_shape=jax.ShapeDtypeStruct((B, OUTPUT_SIZE), jnp.float32),
        in_specs=[vmem] * (2 + len(params)),
        out_specs=vmem,
        scratch_shapes=[
            pltpu.VMEM((T * B, HIDDEN), jnp.float32),   # layer-0 outputs
            pltpu.VMEM((T * B, HIDDEN), jnp.float32),   # layer-1 outputs
        ],
    )(x_flat, sel, *params)


# --------------------------- deterministic parameter construction ---------------------------
def _reorder_gates(w):
    """PyTorch LSTM gate order [i, f, g, o] -> kernel order [i, f, o, g] along axis 0."""
    i, f, g, o = jnp.split(w, 4, axis=0)
    return jnp.concatenate([i, f, o, g], axis=0)


def make_params(key):
    def uni(k, shape, scale):
        return jax.random.uniform(k, shape, jnp.float32, -scale, scale)

    ks = jax.random.split(key, 20)
    s = 1.0 / jnp.sqrt(HIDDEN)

    # Raw parameters in PyTorch layout (used by the pure-JAX reference).
    w_ih0 = uni(ks[0], (4 * HIDDEN, INPUT_SIZE), s)
    w_hh0 = uni(ks[1], (4 * HIDDEN, HIDDEN), s)
    b_ih0 = uni(ks[2], (4 * HIDDEN,), s)
    b_hh0 = uni(ks[3], (4 * HIDDEN,), s)
    w_ih1 = uni(ks[4], (4 * HIDDEN, HIDDEN), s)
    w_hh1 = uni(ks[5], (4 * HIDDEN, HIDDEN), s)
    b_ih1 = uni(ks[6], (4 * HIDDEN,), s)
    b_hh1 = uni(ks[7], (4 * HIDDEN,), s)
    wa1 = uni(ks[8], (HIDDEN, HIDDEN), s)
    ba1 = uni(ks[9], (HIDDEN,), s)
    wa2 = uni(ks[10], (1, HIDDEN), s)
    ba2 = uni(ks[11], (1,), s)
    wf1 = uni(ks[12], (HIDDEN // 2, HIDDEN), s)
    bf1 = uni(ks[13], (HIDDEN // 2,), s)
    wf2 = uni(ks[14], (OUTPUT_SIZE, HIDDEN // 2), s)
    bf2 = uni(ks[15], (OUTPUT_SIZE,), s)

    raw_params = (w_ih0, w_hh0, b_ih0, b_hh0, w_ih1, w_hh1, b_ih1, b_hh1,
                  wa1, ba1, wa2, ba2, wf1, bf1, wf2, bf2)

    # Kernel layout: gate-reordered [i,f,o,g], pre-transposed to (in, out),
    # LSTM bias pairs folded, biases as (1, N), wa2 kept as a (1, H) row.
    kernel_params = (
        _reorder_gates(w_ih0).T, _reorder_gates(w_hh0).T,
        _reorder_gates(b_ih0 + b_hh0)[None, :],
        _reorder_gates(w_ih1).T, _reorder_gates(w_hh1).T,
        _reorder_gates(b_ih1 + b_hh1)[None, :],
        wa1.T, ba1[None, :], wa2, ba2[None, :],
        wf1.T, bf1[None, :], wf2.T, bf2[None, :],
    )
    return raw_params, kernel_params


# ------------------------------- pure-JAX reference (for check) ------------------------------
def reference_forward(x, raw_params):
    (w_ih0, w_hh0, b_ih0, b_hh0, w_ih1, w_hh1, b_ih1, b_hh1,
     wa1, ba1, wa2, ba2, wf1, bf1, wf2, bf2) = raw_params

    def lstm(xs, w_ih, w_hh, b_ih, b_hh):
        B = xs.shape[0]
        H = w_hh.shape[1]
        h = jnp.zeros((B, H), jnp.float32)
        c = jnp.zeros((B, H), jnp.float32)
        outs = []
        for t in range(xs.shape[1]):
            g = xs[:, t, :] @ w_ih.T + h @ w_hh.T + b_ih + b_hh
            i = jax.nn.sigmoid(g[:, 0 * H:1 * H])
            f = jax.nn.sigmoid(g[:, 1 * H:2 * H])
            gg = jnp.tanh(g[:, 2 * H:3 * H])
            o = jax.nn.sigmoid(g[:, 3 * H:4 * H])
            c = f * c + i * gg
            h = o * jnp.tanh(c)
            outs.append(h)
        return jnp.stack(outs, axis=1)  # (B, T, H)

    seq0 = lstm(x, w_ih0, w_hh0, b_ih0, b_hh0)
    seq1 = lstm(seq0, w_ih1, w_hh1, b_ih1, b_hh1)
    scores = jnp.tanh(seq1 @ wa1.T + ba1) @ wa2.T + ba2    # (B, T, 1)
    w = jax.nn.softmax(scores, axis=1)
    context = jnp.sum(w * seq1, axis=1)                    # (B, H)
    h1 = jnp.maximum(context @ wf1.T + bf1, 0.0)
    return h1 @ wf2.T + bf2


if __name__ == "__main__":
    key = jax.random.PRNGKey(0)
    kx, kp = jax.random.split(key)
    x = jax.random.normal(kx, (BATCH, SEQ, INPUT_SIZE), jnp.float32)
    raw_params, kernel_params = make_params(kp)

    out = hybrid_forward(x, kernel_params)
    out = jax.block_until_ready(out)

    ref = reference_forward(x, raw_params)
    assert out.shape == (BATCH, OUTPUT_SIZE)
    assert jnp.allclose(out, ref, rtol=2e-2, atol=2e-2), (out, ref)

    print("KERNEL_OK")
</pallas_src>

<mosaic_0001>
module attributes {stable_mosaic.version = 11 : i64} {
  func.func @hybrid_kernel(%arg0: memref<16x4xf32, #tpu.memory_space<vmem>>, %arg1: memref<2x16xf32, #tpu.memory_space<vmem>>, %arg2: memref<4x128xf32, #tpu.memory_space<vmem>>, %arg3: memref<32x128xf32, #tpu.memory_space<vmem>>, %arg4: memref<1x128xf32, #tpu.memory_space<vmem>>, %arg5: memref<32x128xf32, #tpu.memory_space<vmem>>, %arg6: memref<32x128xf32, #tpu.memory_space<vmem>>, %arg7: memref<1x128xf32, #tpu.memory_space<vmem>>, %arg8: memref<32x32xf32, #tpu.memory_space<vmem>>, %arg9: memref<1x32xf32, #tpu.memory_space<vmem>>, %arg10: memref<1x32xf32, #tpu.memory_space<vmem>>, %arg11: memref<1x1xf32, #tpu.memory_space<vmem>>, %arg12: memref<32x16xf32, #tpu.memory_space<vmem>>, %arg13: memref<1x16xf32, #tpu.memory_space<vmem>>, %arg14: memref<16x3xf32, #tpu.memory_space<vmem>>, %arg15: memref<1x3xf32, #tpu.memory_space<vmem>>, %arg16: memref<2x3xf32, #tpu.memory_space<vmem>>, %arg17: memref<16x32xf32, #tpu.memory_space<vmem>>, %arg18: memref<16x32xf32, #tpu.memory_space<vmem>>) attributes {dimension_semantics = [], scalar_prefetch = 0 : i64, scratch_operands = 2 : i64, tpu.core_type = #tpu.core_type<tc>} {
    %c0 = arith.constant 0 : index
    %c0_0 = arith.constant 0 : index
    %0 = vector.load %arg0[%c0, %c0_0] : memref<16x4xf32, #tpu.memory_space<vmem>>, vector<16x4xf32>
    %c0_1 = arith.constant 0 : index
    %c0_2 = arith.constant 0 : index
    %1 = vector.load %arg2[%c0_1, %c0_2] : memref<4x128xf32, #tpu.memory_space<vmem>>, vector<4x128xf32>
    %cst = arith.constant dense<0.000000e+00> : vector<16x128xf32>
    %2 = tpu.matmul %0, %1, %cst {dimension_numbers = #tpu.dot_dimension_numbers<[1], [0], [0], [1], [0, 0, 1, 1], [], []>} : vector<16x4xf32>, vector<4x128xf32>, vector<16x128xf32> -> vector<16x128xf32>
    %c0_3 = arith.constant 0 : index
    %c0_4 = arith.constant 0 : index
    %3 = vector.load %arg4[%c0_3, %c0_4] : memref<1x128xf32, #tpu.memory_space<vmem>>, vector<1x128xf32>
    %4 = vector.broadcast %3 : vector<1x128xf32> to vector<16x128xf32>
    %5 = arith.addf %2, %4 : vector<16x128xf32>
    %c0_5 = arith.constant 0 : index
    %c0_6 = arith.constant 0 : index
    %6 = vector.load %arg3[%c0_5, %c0_6] : memref<32x128xf32, #tpu.memory_space<vmem>>, vector<32x128xf32>
    %cst_7 = arith.constant 0.000000e+00 : f32
    %7 = vector.broadcast %cst_7 : f32 to vector<2x32xf32>
    %cst_8 = arith.constant 0.000000e+00 : f32
    %8 = vector.broadcast %cst_8 : f32 to vector<2x32xf32>
    %9 = vector.extract_strided_slice %5 {offsets = [0, 0], sizes = [2, 128], strides = [1, 1]} : vector<16x128xf32> to vector<2x128xf32>
    %cst_9 = arith.constant dense<0.000000e+00> : vector<2x128xf32>
    %10 = tpu.matmul %7, %6, %cst_9 {dimension_numbers = #tpu.dot_dimension_numbers<[1], [0], [0], [1], [0, 0, 1, 1], [], []>} : vector<2x32xf32>, vector<32x128xf32>, vector<2x128xf32> -> vector<2x128xf32>
    %11 = arith.addf %9, %10 : vector<2x128xf32>
    %12 = vector.extract_strided_slice %11 {offsets = [0, 0], sizes = [2, 96], strides = [1, 1]} : vector<2x128xf32> to vector<2x96xf32>
    %13 = arith.negf %12 : vector<2x96xf32>
    %14 = math.exp %13 : vector<2x96xf32>
    %cst_10 = arith.constant 1.000000e+00 : f32
    %15 = vector.broadcast %cst_10 : f32 to vector<2x96xf32>
    %16 = arith.addf %15, %14 : vector<2x96xf32>
    %17 = arith.divf %15, %16 : vector<2x96xf32>
    %18 = vector.extract_strided_slice %11 {offsets = [0, 96], sizes = [2, 32], strides = [1, 1]} : vector<2x128xf32> to vector<2x32xf32>
    %19 = math.tanh %18 : vector<2x32xf32>
    %20 = vector.extract_strided_slice %17 {offsets = [0, 32], sizes = [2, 32], strides = [1, 1]} : vector<2x96xf32> to vector<2x32xf32>
    %21 = arith.mulf %20, %8 : vector<2x32xf32>
    %22 = vector.extract_strided_slice %17 {offsets = [0, 0], sizes = [2, 32], strides = [1, 1]} : vector<2x96xf32> to vector<2x32xf32>
    %23 = arith.mulf %22, %19 : vector<2x32xf32>
    %24 = arith.addf %21, %23 : vector<2x32xf32>
    %25 = vector.extract_strided_slice %17 {offsets = [0, 64], sizes = [2, 32], strides = [1, 1]} : vector<2x96xf32> to vector<2x32xf32>
    %26 = math.tanh %24 : vector<2x32xf32>
    %27 = arith.mulf %25, %26 : vector<2x32xf32>
    %c0_11 = arith.constant 0 : index
    %c0_12 = arith.constant 0 : index
    %28 = vector.load %arg17[%c0_11, %c0_12] : memref<16x32xf32, #tpu.memory_space<vmem>>, vector<2x32xf32>
    tpu.vector_store %arg17[%c0_11, %c0_12], %27 {strides = array<i32>} : memref<16x32xf32, #tpu.memory_space<vmem>>, vector<2x32xf32>,
    %29 = vector.extract_strided_slice %5 {offsets = [2, 0], sizes = [2, 128], strides = [1, 1]} : vector<16x128xf32> to vector<2x128xf32>
    %cst_13 = arith.constant dense<0.000000e+00> : vector<2x128xf32>
    %30 = tpu.matmul %27, %6, %cst_13 {dimension_numbers = #tpu.dot_dimension_numbers<[1], [0], [0], [1], [0, 0, 1, 1], [], []>} : vector<2x32xf32>, vector<32x128xf32>, vector<2x128xf32> -> vector<2x128xf32>
    %31 = arith.addf %29, %30 : vector<2x128xf32>
    %32 = vector.extract_strided_slice %31 {offsets = [0, 0], sizes = [2, 96], strides = [1, 1]} : vector<2x128xf32> to vector<2x96xf32>
    %33 = arith.negf %32 : vector<2x96xf32>
    %34 = math.exp %33 : vector<2x96xf32>
    %cst_14 = arith.constant 1.000000e+00 : f32
    %35 = vector.broadcast %cst_14 : f32 to vector<2x96xf32>
    %36 = arith.addf %35, %34 : vector<2x96xf32>
    %37 = arith.divf %35, %36 : vector<2x96xf32>
    %38 = vector.extract_strided_slice %31 {offsets = [0, 96], sizes = [2, 32], strides = [1, 1]} : vector<2x128xf32> to vector<2x32xf32>
    %39 = math.tanh %38 : vector<2x32xf32>
    %40 = vector.extract_strided_slice %37 {offsets = [0, 32], sizes = [2, 32], strides = [1, 1]} : vector<2x96xf32> to vector<2x32xf32>
    %41 = arith.mulf %40, %24 : vector<2x32xf32>
    %42 = vector.extract_strided_slice %37 {offsets = [0, 0], sizes = [2, 32], strides = [1, 1]} : vector<2x96xf32> to vector<2x32xf32>
    %43 = arith.mulf %42, %39 : vector<2x32xf32>
    %44 = arith.addf %41, %43 : vector<2x32xf32>
    %45 = vector.extract_strided_slice %37 {offsets = [0, 64], sizes = [2, 32], strides = [1, 1]} : vector<2x96xf32> to vector<2x32xf32>
    %46 = math.tanh %44 : vector<2x32xf32>
    %47 = arith.mulf %45, %46 : vector<2x32xf32>
    %c2 = arith.constant 2 : index
    %c0_15 = arith.constant 0 : index
    %48 = vector.load %arg17[%c2, %c0_15] : memref<16x32xf32, #tpu.memory_space<vmem>>, vector<2x32xf32>
    tpu.vector_store %arg17[%c2, %c0_15], %47 {strides = array<i32>} : memref<16x32xf32, #tpu.memory_space<vmem>>, vector<2x32xf32>,
    %49 = vector.extract_strided_slice %5 {offsets = [4, 0], sizes = [2, 128], strides = [1, 1]} : vector<16x128xf32> to vector<2x128xf32>
    %cst_16 = arith.constant dense<0.000000e+00> : vector<2x128xf32>
    %50 = tpu.matmul %47, %6, %cst_16 {dimension_numbers = #tpu.dot_dimension_numbers<[1], [0], [0], [1], [0, 0, 1, 1], [], []>} : vector<2x32xf32>, vector<32x128xf32>, vector<2x128xf32> -> vector<2x128xf32>
    %51 = arith.addf %49, %50 : vector<2x128xf32>
    %52 = vector.extract_strided_slice %51 {offsets = [0, 0], sizes = [2, 96], strides = [1, 1]} : vector<2x128xf32> to vector<2x96xf32>
    %53 = arith.negf %52 : vector<2x96xf32>
    %54 = math.exp %53 : vector<2x96xf32>
    %cst_17 = arith.constant 1.000000e+00 : f32
    %55 = vector.broadcast %cst_17 : f32 to vector<2x96xf32>
    %56 = arith.addf %55, %54 : vector<2x96xf32>
    %57 = arith.divf %55, %56 : vector<2x96xf32>
    %58 = vector.extract_strided_slice %51 {offsets = [0, 96], sizes = [2, 32], strides = [1, 1]} : vector<2x128xf32> to vector<2x32xf32>
    %59 = math.tanh %58 : vector<2x32xf32>
    %60 = vector.extract_strided_slice %57 {offsets = [0, 32], sizes = [2, 32], strides = [1, 1]} : vector<2x96xf32> to vector<2x32xf32>
    %61 = arith.mulf %60, %44 : vector<2x32xf32>
    %62 = vector.extract_strided_slice %57 {offsets = [0, 0], sizes = [2, 32], strides = [1, 1]} : vector<2x96xf32> to vector<2x32xf32>
    %63 = arith.mulf %62, %59 : vector<2x32xf32>
    %64 = arith.addf %61, %63 : vector<2x32xf32>
    %65 = vector.extract_strided_slice %57 {offsets = [0, 64], sizes = [2, 32], strides = [1, 1]} : vector<2x96xf32> to vector<2x32xf32>
    %66 = math.tanh %64 : vector<2x32xf32>
    %67 = arith.mulf %65, %66 : vector<2x32xf32>
    %c4 = arith.constant 4 : index
    %c0_18 = arith.constant 0 : index
    %68 = vector.load %arg17[%c4, %c0_18] : memref<16x32xf32, #tpu.memory_space<vmem>>, vector<2x32xf32>
    tpu.vector_store %arg17[%c4, %c0_18], %67 {strides = array<i32>} : memref<16x32xf32, #tpu.memory_space<vmem>>, vector<2x32xf32>,
    %69 = vector.extract_strided_slice %5 {offsets = [6, 0], sizes = [2, 128], strides = [1, 1]} : vector<16x128xf32> to vector<2x128xf32>
    %cst_19 = arith.constant dense<0.000000e+00> : vector<2x128xf32>
    %70 = tpu.matmul %67, %6, %cst_19 {dimension_numbers = #tpu.dot_dimension_numbers<[1], [0], [0], [1], [0, 0, 1, 1], [], []>} : vector<2x32xf32>, vector<32x128xf32>, vector<2x128xf32> -> vector<2x128xf32>
    %71 = arith.addf %69, %70 : vector<2x128xf32>
    %72 = vector.extract_strided_slice %71 {offsets = [0, 0], sizes = [2, 96], strides = [1, 1]} : vector<2x128xf32> to vector<2x96xf32>
    %73 = arith.negf %72 : vector<2x96xf32>
    %74 = math.exp %73 : vector<2x96xf32>
    %cst_20 = arith.constant 1.000000e+00 : f32
    %75 = vector.broadcast %cst_20 : f32 to vector<2x96xf32>
    %76 = arith.addf %75, %74 : vector<2x96xf32>
    %77 = arith.divf %75, %76 : vector<2x96xf32>
    %78 = vector.extract_strided_slice %71 {offsets = [0, 96], sizes = [2, 32], strides = [1, 1]} : vector<2x128xf32> to vector<2x32xf32>
    %79 = math.tanh %78 : vector<2x32xf32>
    %80 = vector.extract_strided_slice %77 {offsets = [0, 32], sizes = [2, 32], strides = [1, 1]} : vector<2x96xf32> to vector<2x32xf32>
    %81 = arith.mulf %80, %64 : vector<2x32xf32>
    %82 = vector.extract_strided_slice %77 {offsets = [0, 0], sizes = [2, 32], strides = [1, 1]} : vector<2x96xf32> to vector<2x32xf32>
    %83 = arith.mulf %82, %79 : vector<2x32xf32>
    %84 = arith.addf %81, %83 : vector<2x32xf32>
    %85 = vector.extract_strided_slice %77 {offsets = [0, 64], sizes = [2, 32], strides = [1, 1]} : vector<2x96xf32> to vector<2x32xf32>
    %86 = math.tanh %84 : vector<2x32xf32>
    %87 = arith.mulf %85, %86 : vector<2x32xf32>
    %c6 = arith.constant 6 : index
    %c0_21 = arith.constant 0 : index
    %88 = vector.load %arg17[%c6, %c0_21] : memref<16x32xf32, #tpu.memory_space<vmem>>, vector<2x32xf32>
    tpu.vector_store %arg17[%c6, %c0_21], %87 {strides = array<i32>} : memref<16x32xf32, #tpu.memory_space<vmem>>, vector<2x32xf32>,
    %89 = vector.extract_strided_slice %5 {offsets = [8, 0], sizes = [2, 128], strides = [1, 1]} : vector<16x128xf32> to vector<2x128xf32>
    %cst_22 = arith.constant dense<0.000000e+00> : vector<2x128xf32>
    %90 = tpu.matmul %87, %6, %cst_22 {dimension_numbers = #tpu.dot_dimension_numbers<[1], [0], [0], [1], [0, 0, 1, 1], [], []>} : vector<2x32xf32>, vector<32x128xf32>, vector<2x128xf32> -> vector<2x128xf32>
    %91 = arith.addf %89, %90 : vector<2x128xf32>
    %92 = vector.extract_strided_slice %91 {offsets = [0, 0], sizes = [2, 96], strides = [1, 1]} : vector<2x128xf32> to vector<2x96xf32>
    %93 = arith.negf %92 : vector<2x96xf32>
    %94 = math.exp %93 : vector<2x96xf32>
    %cst_23 = arith.constant 1.000000e+00 : f32
    %95 = vector.broadcast %cst_23 : f32 to vector<2x96xf32>
    %96 = arith.addf %95, %94 : vector<2x96xf32>
    %97 = arith.divf %95, %96 : vector<2x96xf32>
    %98 = vector.extract_strided_slice %91 {offsets = [0, 96], sizes = [2, 32], strides = [1, 1]} : vector<2x128xf32> to vector<2x32xf32>
    %99 = math.tanh %98 : vector<2x32xf32>
    %100 = vector.extract_strided_slice %97 {offsets = [0, 32], sizes = [2, 32], strides = [1, 1]} : vector<2x96xf32> to vector<2x32xf32>
    %101 = arith.mulf %100, %84 : vector<2x32xf32>
    %102 = vector.extract_strided_slice %97 {offsets = [0, 0], sizes = [2, 32], strides = [1, 1]} : vector<2x96xf32> to vector<2x32xf32>
    %103 = arith.mulf %102, %99 : vector<2x32xf32>
    %104 = arith.addf %101, %103 : vector<2x32xf32>
    %105 = vector.extract_strided_slice %97 {offsets = [0, 64], sizes = [2, 32], strides = [1, 1]} : vector<2x96xf32> to vector<2x32xf32>
    %106 = math.tanh %104 : vector<2x32xf32>
    %107 = arith.mulf %105, %106 : vector<2x32xf32>
    %c8 = arith.constant 8 : index
    %c0_24 = arith.constant 0 : index
    %108 = vector.load %arg17[%c8, %c0_24] : memref<16x32xf32, #tpu.memory_space<vmem>>, vector<2x32xf32>
    tpu.vector_store %arg17[%c8, %c0_24], %107 {strides = array<i32>} : memref<16x32xf32, #tpu.memory_space<vmem>>, vector<2x32xf32>,
    %109 = vector.extract_strided_slice %5 {offsets = [10, 0], sizes = [2, 128], strides = [1, 1]} : vector<16x128xf32> to vector<2x128xf32>
    %cst_25 = arith.constant dense<0.000000e+00> : vector<2x128xf32>
    %110 = tpu.matmul %107, %6, %cst_25 {dimension_numbers = #tpu.dot_dimension_numbers<[1], [0], [0], [1], [0, 0, 1, 1], [], []>} : vector<2x32xf32>, vector<32x128xf32>, vector<2x128xf32> -> vector<2x128xf32>
    %111 = arith.addf %109, %110 : vector<2x128xf32>
    %112 = vector.extract_strided_slice %111 {offsets = [0, 0], sizes = [2, 96], strides = [1, 1]} : vector<2x128xf32> to vector<2x96xf32>
    %113 = arith.negf %112 : vector<2x96xf32>
    %114 = math.exp %113 : vector<2x96xf32>
    %cst_26 = arith.constant 1.000000e+00 : f32
    %115 = vector.broadcast %cst_26 : f32 to vector<2x96xf32>
    %116 = arith.addf %115, %114 : vector<2x96xf32>
    %117 = arith.divf %115, %116 : vector<2x96xf32>
    %118 = vector.extract_strided_slice %111 {offsets = [0, 96], sizes = [2, 32], strides = [1, 1]} : vector<2x128xf32> to vector<2x32xf32>
    %119 = math.tanh %118 : vector<2x32xf32>
    %120 = vector.extract_strided_slice %117 {offsets = [0, 32], sizes = [2, 32], strides = [1, 1]} : vector<2x96xf32> to vector<2x32xf32>
    %121 = arith.mulf %120, %104 : vector<2x32xf32>
    %122 = vector.extract_strided_slice %117 {offsets = [0, 0], sizes = [2, 32], strides = [1, 1]} : vector<2x96xf32> to vector<2x32xf32>
    %123 = arith.mulf %122, %119 : vector<2x32xf32>
    %124 = arith.addf %121, %123 : vector<2x32xf32>
    %125 = vector.extract_strided_slice %117 {offsets = [0, 64], sizes = [2, 32], strides = [1, 1]} : vector<2x96xf32> to vector<2x32xf32>
    %126 = math.tanh %124 : vector<2x32xf32>
    %127 = arith.mulf %125, %126 : vector<2x32xf32>
    %c10 = arith.constant 10 : index
    %c0_27 = arith.constant 0 : index
    %128 = vector.load %arg17[%c10, %c0_27] : memref<16x32xf32, #tpu.memory_space<vmem>>, vector<2x32xf32>
    tpu.vector_store %arg17[%c10, %c0_27], %127 {strides = array<i32>} : memref<16x32xf32, #tpu.memory_space<vmem>>, vector<2x32xf32>,
    %129 = vector.extract_strided_slice %5 {offsets = [12, 0], sizes = [2, 128], strides = [1, 1]} : vector<16x128xf32> to vector<2x128xf32>
    %cst_28 = arith.constant dense<0.000000e+00> : vector<2x128xf32>
    %130 = tpu.matmul %127, %6, %cst_28 {dimension_numbers = #tpu.dot_dimension_numbers<[1], [0], [0], [1], [0, 0, 1, 1], [], []>} : vector<2x32xf32>, vector<32x128xf32>, vector<2x128xf32> -> vector<2x128xf32>
    %131 = arith.addf %129, %130 : vector<2x128xf32>
    %132 = vector.extract_strided_slice %131 {offsets = [0, 0], sizes = [2, 96], strides = [1, 1]} : vector<2x128xf32> to vector<2x96xf32>
    %133 = arith.negf %132 : vector<2x96xf32>
    %134 = math.exp %133 : vector<2x96xf32>
    %cst_29 = arith.constant 1.000000e+00 : f32
    %135 = vector.broadcast %cst_29 : f32 to vector<2x96xf32>
    %136 = arith.addf %135, %134 : vector<2x96xf32>
    %137 = arith.divf %135, %136 : vector<2x96xf32>
    %138 = vector.extract_strided_slice %131 {offsets = [0, 96], sizes = [2, 32], strides = [1, 1]} : vector<2x128xf32> to vector<2x32xf32>
    %139 = math.tanh %138 : vector<2x32xf32>
    %140 = vector.extract_strided_slice %137 {offsets = [0, 32], sizes = [2, 32], strides = [1, 1]} : vector<2x96xf32> to vector<2x32xf32>
    %141 = arith.mulf %140, %124 : vector<2x32xf32>
    %142 = vector.extract_strided_slice %137 {offsets = [0, 0], sizes = [2, 32], strides = [1, 1]} : vector<2x96xf32> to vector<2x32xf32>
    %143 = arith.mulf %142, %139 : vector<2x32xf32>
    %144 = arith.addf %141, %143 : vector<2x32xf32>
    %145 = vector.extract_strided_slice %137 {offsets = [0, 64], sizes = [2, 32], strides = [1, 1]} : vector<2x96xf32> to vector<2x32xf32>
    %146 = math.tanh %144 : vector<2x32xf32>
    %147 = arith.mulf %145, %146 : vector<2x32xf32>
    %c12 = arith.constant 12 : index
    %c0_30 = arith.constant 0 : index
    %148 = vector.load %arg17[%c12, %c0_30] : memref<16x32xf32, #tpu.memory_space<vmem>>, vector<2x32xf32>
    tpu.vector_store %arg17[%c12, %c0_30], %147 {strides = array<i32>} : memref<16x32xf32, #tpu.memory_space<vmem>>, vector<2x32xf32>,
    %149 = vector.extract_strided_slice %5 {offsets = [14, 0], sizes = [2, 128], strides = [1, 1]} : vector<16x128xf32> to vector<2x128xf32>
    %cst_31 = arith.constant dense<0.000000e+00> : vector<2x128xf32>
    %150 = tpu.matmul %147, %6, %cst_31 {dimension_numbers = #tpu.dot_dimension_numbers<[1], [0], [0], [1], [0, 0, 1, 1], [], []>} : vector<2x32xf32>, vector<32x128xf32>, vector<2x128xf32> -> vector<2x128xf32>
    %151 = arith.addf %149, %150 : vector<2x128xf32>
    %152 = vector.extract_strided_slice %151 {offsets = [0, 0], sizes = [2, 96], strides = [1, 1]} : vector<2x128xf32> to vector<2x96xf32>
    %153 = arith.negf %152 : vector<2x96xf32>
    %154 = math.exp %153 : vector<2x96xf32>
    %cst_32 = arith.constant 1.000000e+00 : f32
    %155 = vector.broadcast %cst_32 : f32 to vector<2x96xf32>
    %156 = arith.addf %155, %154 : vector<2x96xf32>
    %157 = arith.divf %155, %156 : vector<2x96xf32>
    %158 = vector.extract_strided_slice %151 {offsets = [0, 96], sizes = [2, 32], strides = [1, 1]} : vector<2x128xf32> to vector<2x32xf32>
    %159 = math.tanh %158 : vector<2x32xf32>
    %160 = vector.extract_strided_slice %157 {offsets = [0, 32], sizes = [2, 32], strides = [1, 1]} : vector<2x96xf32> to vector<2x32xf32>
    %161 = arith.mulf %160, %144 : vector<2x32xf32>
    %162 = vector.extract_strided_slice %157 {offsets = [0, 0], sizes = [2, 32], strides = [1, 1]} : vector<2x96xf32> to vector<2x32xf32>
    %163 = arith.mulf %162, %159 : vector<2x32xf32>
    %164 = arith.addf %161, %163 : vector<2x32xf32>
    %165 = vector.extract_strided_slice %157 {offsets = [0, 64], sizes = [2, 32], strides = [1, 1]} : vector<2x96xf32> to vector<2x32xf32>
    %166 = math.tanh %164 : vector<2x32xf32>
    %167 = arith.mulf %165, %166 : vector<2x32xf32>
    %c14 = arith.constant 14 : index
    %c0_33 = arith.constant 0 : index
    %168 = vector.load %arg17[%c14, %c0_33] : memref<16x32xf32, #tpu.memory_space<vmem>>, vector<2x32xf32>
    tpu.vector_store %arg17[%c14, %c0_33], %167 {strides = array<i32>} : memref<16x32xf32, #tpu.memory_space<vmem>>, vector<2x32xf32>,
    %c0_34 = arith.constant 0 : index
    %c0_35 = arith.constant 0 : index
    %169 = vector.load %arg17[%c0_34, %c0_35] : memref<16x32xf32, #tpu.memory_space<vmem>>, vector<16x32xf32>
    %c0_36 = arith.constant 0 : index
    %c0_37 = arith.constant 0 : index
    %170 = vector.load %arg5[%c0_36, %c0_37] : memref<32x128xf32, #tpu.memory_space<vmem>>, vector<32x128xf32>
    %cst_38 = arith.constant dense<0.000000e+00> : vector<16x128xf32>
    %171 = tpu.matmul %169, %170, %cst_38 {dimension_numbers = #tpu.dot_dimension_numbers<[1], [0], [0], [1], [0, 0, 1, 1], [], []>} : vector<16x32xf32>, vector<32x128xf32>, vector<16x128xf32> -> vector<16x128xf32>
    %c0_39 = arith.constant 0 : index
    %c0_40 = arith.constant 0 : index
    %172 = vector.load %arg7[%c0_39, %c0_40] : memref<1x128xf32, #tpu.memory_space<vmem>>, vector<1x128xf32>
    %173 = vector.broadcast %172 : vector<1x128xf32> to vector<16x128xf32>
    %174 = arith.addf %171, %173 : vector<16x128xf32>
    %c0_41 = arith.constant 0 : index
    %c0_42 = arith.constant 0 : index
    %175 = vector.load %arg6[%c0_41, %c0_42] : memref<32x128xf32, #tpu.memory_space<vmem>>, vector<32x128xf32>
    %cst_43 = arith.constant 0.000000e+00 : f32
    %176 = vector.broadcast %cst_43 : f32 to vector<2x32xf32>
    %cst_44 = arith.constant 0.000000e+00 : f32
    %177 = vector.broadcast %cst_44 : f32 to vector<2x32xf32>
    %178 = vector.extract_strided_slice %174 {offsets = [0, 0], sizes = [2, 128], strides = [1, 1]} : vector<16x128xf32> to vector<2x128xf32>
    %cst_45 = arith.constant dense<0.000000e+00> : vector<2x128xf32>
    %179 = tpu.matmul %176, %175, %cst_45 {dimension_numbers = #tpu.dot_dimension_numbers<[1], [0], [0], [1], [0, 0, 1, 1], [], []>} : vector<2x32xf32>, vector<32x128xf32>, vector<2x128xf32> -> vector<2x128xf32>
    %180 = arith.addf %178, %179 : vector<2x128xf32>
    %181 = vector.extract_strided_slice %180 {offsets = [0, 0], sizes = [2, 96], strides = [1, 1]} : vector<2x128xf32> to vector<2x96xf32>
    %182 = arith.negf %181 : vector<2x96xf32>
    %183 = math.exp %182 : vector<2x96xf32>
    %cst_46 = arith.constant 1.000000e+00 : f32
    %184 = vector.broadcast %cst_46 : f32 to vector<2x96xf32>
    %185 = arith.addf %184, %183 : vector<2x96xf32>
    %186 = arith.divf %184, %185 : vector<2x96xf32>
    %187 = vector.extract_strided_slice %180 {offsets = [0, 96], sizes = [2, 32], strides = [1, 1]} : vector<2x128xf32> to vector<2x32xf32>
    %188 = math.tanh %187 : vector<2x32xf32>
    %189 = vector.extract_strided_slice %186 {offsets = [0, 32], sizes = [2, 32], strides = [1, 1]} : vector<2x96xf32> to vector<2x32xf32>
    %190 = arith.mulf %189, %177 : vector<2x32xf32>
    %191 = vector.extract_strided_slice %186 {offsets = [0, 0], sizes = [2, 32], strides = [1, 1]} : vector<2x96xf32> to vector<2x32xf32>
    %192 = arith.mulf %191, %188 : vector<2x32xf32>
    %193 = arith.addf %190, %192 : vector<2x32xf32>
    %194 = vector.extract_strided_slice %186 {offsets = [0, 64], sizes = [2, 32], strides = [1, 1]} : vector<2x96xf32> to vector<2x32xf32>
    %195 = math.tanh %193 : vector<2x32xf32>
    %196 = arith.mulf %194, %195 : vector<2x32xf32>
    %c0_47 = arith.constant 0 : index
    %c0_48 = arith.constant 0 : index
    %197 = vector.load %arg18[%c0_47, %c0_48] : memref<16x32xf32, #tpu.memory_space<vmem>>, vector<2x32xf32>
    tpu.vector_store %arg18[%c0_47, %c0_48], %196 {strides = array<i32>} : memref<16x32xf32, #tpu.memory_space<vmem>>, vector<2x32xf32>,
    %198 = vector.extract_strided_slice %174 {offsets = [2, 0], sizes = [2, 128], strides = [1, 1]} : vector<16x128xf32> to vector<2x128xf32>
    %cst_49 = arith.constant dense<0.000000e+00> : vector<2x128xf32>
    %199 = tpu.matmul %196, %175, %cst_49 {dimension_numbers = #tpu.dot_dimension_numbers<[1], [0], [0], [1], [0, 0, 1, 1], [], []>} : vector<2x32xf32>, vector<32x128xf32>, vector<2x128xf32> -> vector<2x128xf32>
    %200 = arith.addf %198, %199 : vector<2x128xf32>
    %201 = vector.extract_strided_slice %200 {offsets = [0, 0], sizes = [2, 96], strides = [1, 1]} : vector<2x128xf32> to vector<2x96xf32>
    %202 = arith.negf %201 : vector<2x96xf32>
    %203 = math.exp %202 : vector<2x96xf32>
    %cst_50 = arith.constant 1.000000e+00 : f32
    %204 = vector.broadcast %cst_50 : f32 to vector<2x96xf32>
    %205 = arith.addf %204, %203 : vector<2x96xf32>
    %206 = arith.divf %204, %205 : vector<2x96xf32>
    %207 = vector.extract_strided_slice %200 {offsets = [0, 96], sizes = [2, 32], strides = [1, 1]} : vector<2x128xf32> to vector<2x32xf32>
    %208 = math.tanh %207 : vector<2x32xf32>
    %209 = vector.extract_strided_slice %206 {offsets = [0, 32], sizes = [2, 32], strides = [1, 1]} : vector<2x96xf32> to vector<2x32xf32>
    %210 = arith.mulf %209, %193 : vector<2x32xf32>
    %211 = vector.extract_strided_slice %206 {offsets = [0, 0], sizes = [2, 32], strides = [1, 1]} : vector<2x96xf32> to vector<2x32xf32>
    %212 = arith.mulf %211, %208 : vector<2x32xf32>
    %213 = arith.addf %210, %212 : vector<2x32xf32>
    %214 = vector.extract_strided_slice %206 {offsets = [0, 64], sizes = [2, 32], strides = [1, 1]} : vector<2x96xf32> to vector<2x32xf32>
    %215 = math.tanh %213 : vector<2x32xf32>
    %216 = arith.mulf %214, %215 : vector<2x32xf32>
    %c2_51 = arith.constant 2 : index
    %c0_52 = arith.constant 0 : index
    %217 = vector.load %arg18[%c2_51, %c0_52] : memref<16x32xf32, #tpu.memory_space<vmem>>, vector<2x32xf32>
    tpu.vector_store %arg18[%c2_51, %c0_52], %216 {strides = array<i32>} : memref<16x32xf32, #tpu.memory_space<vmem>>, vector<2x32xf32>,
    %218 = vector.extract_strided_slice %174 {offsets = [4, 0], sizes = [2, 128], strides = [1, 1]} : vector<16x128xf32> to vector<2x128xf32>
    %cst_53 = arith.constant dense<0.000000e+00> : vector<2x128xf32>
    %219 = tpu.matmul %216, %175, %cst_53 {dimension_numbers = #tpu.dot_dimension_numbers<[1], [0], [0], [1], [0, 0, 1, 1], [], []>} : vector<2x32xf32>, vector<32x128xf32>, vector<2x128xf32> -> vector<2x128xf32>
    %220 = arith.addf %218, %219 : vector<2x128xf32>
    %221 = vector.extract_strided_slice %220 {offsets = [0, 0], sizes = [2, 96], strides = [1, 1]} : vector<2x128xf32> to vector<2x96xf32>
    %222 = arith.negf %221 : vector<2x96xf32>
    %223 = math.exp %222 : vector<2x96xf32>
    %cst_54 = arith.constant 1.000000e+00 : f32
    %224 = vector.broadcast %cst_54 : f32 to vector<2x96xf32>
    %225 = arith.addf %224, %223 : vector<2x96xf32>
    %226 = arith.divf %224, %225 : vector<2x96xf32>
    %227 = vector.extract_strided_slice %220 {offsets = [0, 96], sizes = [2, 32], strides = [1, 1]} : vector<2x128xf32> to vector<2x32xf32>
    %228 = math.tanh %227 : vector<2x32xf32>
    %229 = vector.extract_strided_slice %226 {offsets = [0, 32], sizes = [2, 32], strides = [1, 1]} : vector<2x96xf32> to vector<2x32xf32>
    %230 = arith.mulf %229, %213 : vector<2x32xf32>
    %231 = vector.extract_strided_slice %226 {offsets = [0, 0], sizes = [2, 32], strides = [1, 1]} : vector<2x96xf32> to vector<2x32xf32>
    %232 = arith.mulf %231, %228 : vector<2x32xf32>
    %233 = arith.addf %230, %232 : vector<2x32xf32>
    %234 = vector.extract_strided_slice %226 {offsets = [0, 64], sizes = [2, 32], strides = [1, 1]} : vector<2x96xf32> to vector<2x32xf32>
    %235 = math.tanh %233 : vector<2x32xf32>
    %236 = arith.mulf %234, %235 : vector<2x32xf32>
    %c4_55 = arith.constant 4 : index
    %c0_56 = arith.constant 0 : index
    %237 = vector.load %arg18[%c4_55, %c0_56] : memref<16x32xf32, #tpu.memory_space<vmem>>, vector<2x32xf32>
    tpu.vector_store %arg18[%c4_55, %c0_56], %236 {strides = array<i32>} : memref<16x32xf32, #tpu.memory_space<vmem>>, vector<2x32xf32>,
    %238 = vector.extract_strided_slice %174 {offsets = [6, 0], sizes = [2, 128], strides = [1, 1]} : vector<16x128xf32> to vector<2x128xf32>
    %cst_57 = arith.constant dense<0.000000e+00> : vector<2x128xf32>
    %239 = tpu.matmul %236, %175, %cst_57 {dimension_numbers = #tpu.dot_dimension_numbers<[1], [0], [0], [1], [0, 0, 1, 1], [], []>} : vector<2x32xf32>, vector<32x128xf32>, vector<2x128xf32> -> vector<2x128xf32>
    %240 = arith.addf %238, %239 : vector<2x128xf32>
    %241 = vector.extract_strided_slice %240 {offsets = [0, 0], sizes = [2, 96], strides = [1, 1]} : vector<2x128xf32> to vector<2x96xf32>
    %242 = arith.negf %241 : vector<2x96xf32>
    %243 = math.exp %242 : vector<2x96xf32>
    %cst_58 = arith.constant 1.000000e+00 : f32
    %244 = vector.broadcast %cst_58 : f32 to vector<2x96xf32>
    %245 = arith.addf %244, %243 : vector<2x96xf32>
    %246 = arith.divf %244, %245 : vector<2x96xf32>
    %247 = vector.extract_strided_slice %240 {offsets = [0, 96], sizes = [2, 32], strides = [1, 1]} : vector<2x128xf32> to vector<2x32xf32>
    %248 = math.tanh %247 : vector<2x32xf32>
    %249 = vector.extract_strided_slice %246 {offsets = [0, 32], sizes = [2, 32], strides = [1, 1]} : vector<2x96xf32> to vector<2x32xf32>
    %250 = arith.mulf %249, %233 : vector<2x32xf32>
    %251 = vector.extract_strided_slice %246 {offsets = [0, 0], sizes = [2, 32], strides = [1, 1]} : vector<2x96xf32> to vector<2x32xf32>
    %252 = arith.mulf %251, %248 : vector<2x32xf32>
    %253 = arith.addf %250, %252 : vector<2x32xf32>
    %254 = vector.extract_strided_slice %246 {offsets = [0, 64], sizes = [2, 32], strides = [1, 1]} : vector<2x96xf32> to vector<2x32xf32>
    %255 = math.tanh %253 : vector<2x32xf32>
    %256 = arith.mulf %254, %255 : vector<2x32xf32>
    %c6_59 = arith.constant 6 : index
    %c0_60 = arith.constant 0 : index
    %257 = vector.load %arg18[%c6_59, %c0_60] : memref<16x32xf32, #tpu.memory_space<vmem>>, vector<2x32xf32>
    tpu.vector_store %arg18[%c6_59, %c0_60], %256 {strides = array<i32>} : memref<16x32xf32, #tpu.memory_space<vmem>>, vector<2x32xf32>,
    %258 = vector.extract_strided_slice %174 {offsets = [8, 0], sizes = [2, 128], strides = [1, 1]} : vector<16x128xf32> to vector<2x128xf32>
    %cst_61 = arith.constant dense<0.000000e+00> : vector<2x128xf32>
    %259 = tpu.matmul %256, %175, %cst_61 {dimension_numbers = #tpu.dot_dimension_numbers<[1], [0], [0], [1], [0, 0, 1, 1], [], []>} : vector<2x32xf32>, vector<32x128xf32>, vector<2x128xf32> -> vector<2x128xf32>
    %260 = arith.addf %258, %259 : vector<2x128xf32>
    %261 = vector.extract_strided_slice %260 {offsets = [0, 0], sizes = [2, 96], strides = [1, 1]} : vector<2x128xf32> to vector<2x96xf32>
    %262 = arith.negf %261 : vector<2x96xf32>
    %263 = math.exp %262 : vector<2x96xf32>
    %cst_62 = arith.constant 1.000000e+00 : f32
    %264 = vector.broadcast %cst_62 : f32 to vector<2x96xf32>
    %265 = arith.addf %264, %263 : vector<2x96xf32>
    %266 = arith.divf %264, %265 : vector<2x96xf32>
    %267 = vector.extract_strided_slice %260 {offsets = [0, 96], sizes = [2, 32], strides = [1, 1]} : vector<2x128xf32> to vector<2x32xf32>
    %268 = math.tanh %267 : vector<2x32xf32>
    %269 = vector.extract_strided_slice %266 {offsets = [0, 32], sizes = [2, 32], strides = [1, 1]} : vector<2x96xf32> to vector<2x32xf32>
    %270 = arith.mulf %269, %253 : vector<2x32xf32>
    %271 = vector.extract_strided_slice %266 {offsets = [0, 0], sizes = [2, 32], strides = [1, 1]} : vector<2x96xf32> to vector<2x32xf32>
    %272 = arith.mulf %271, %268 : vector<2x32xf32>
    %273 = arith.addf %270, %272 : vector<2x32xf32>
    %274 = vector.extract_strided_slice %266 {offsets = [0, 64], sizes = [2, 32], strides = [1, 1]} : vector<2x96xf32> to vector<2x32xf32>
    %275 = math.tanh %273 : vector<2x32xf32>
    %276 = arith.mulf %274, %275 : vector<2x32xf32>
    %c8_63 = arith.constant 8 : index
    %c0_64 = arith.constant 0 : index
    %277 = vector.load %arg18[%c8_63, %c0_64] : memref<16x32xf32, #tpu.memory_space<vmem>>, vector<2x32xf32>
    tpu.vector_store %arg18[%c8_63, %c0_64], %276 {strides = array<i32>} : memref<16x32xf32, #tpu.memory_space<vmem>>, vector<2x32xf32>,
    %278 = vector.extract_strided_slice %174 {offsets = [10, 0], sizes = [2, 128], strides = [1, 1]} : vector<16x128xf32> to vector<2x128xf32>
    %cst_65 = arith.constant dense<0.000000e+00> : vector<2x128xf32>
    %279 = tpu.matmul %276, %175, %cst_65 {dimension_numbers = #tpu.dot_dimension_numbers<[1], [0], [0], [1], [0, 0, 1, 1], [], []>} : vector<2x32xf32>, vector<32x128xf32>, vector<2x128xf32> -> vector<2x128xf32>
    %280 = arith.addf %278, %279 : vector<2x128xf32>
    %281 = vector.extract_strided_slice %280 {offsets = [0, 0], sizes = [2, 96], strides = [1, 1]} : vector<2x128xf32> to vector<2x96xf32>
    %282 = arith.negf %281 : vector<2x96xf32>
    %283 = math.exp %282 : vector<2x96xf32>
    %cst_66 = arith.constant 1.000000e+00 : f32
    %284 = vector.broadcast %cst_66 : f32 to vector<2x96xf32>
    %285 = arith.addf %284, %283 : vector<2x96xf32>
    %286 = arith.divf %284, %285 : vector<2x96xf32>
    %287 = vector.extract_strided_slice %280 {offsets = [0, 96], sizes = [2, 32], strides = [1, 1]} : vector<2x128xf32> to vector<2x32xf32>
    %288 = math.tanh %287 : vector<2x32xf32>
    %289 = vector.extract_strided_slice %286 {offsets = [0, 32], sizes = [2, 32], strides = [1, 1]} : vector<2x96xf32> to vector<2x32xf32>
    %290 = arith.mulf %289, %273 : vector<2x32xf32>
    %291 = vector.extract_strided_slice %286 {offsets = [0, 0], sizes = [2, 32], strides = [1, 1]} : vector<2x96xf32> to vector<2x32xf32>
    %292 = arith.mulf %291, %288 : vector<2x32xf32>
    %293 = arith.addf %290, %292 : vector<2x32xf32>
    %294 = vector.extract_strided_slice %286 {offsets = [0, 64], sizes = [2, 32], strides = [1, 1]} : vector<2x96xf32> to vector<2x32xf32>
    %295 = math.tanh %293 : vector<2x32xf32>
    %296 = arith.mulf %294, %295 : vector<2x32xf32>
    %c10_67 = arith.constant 10 : index
    %c0_68 = arith.constant 0 : index
    %297 = vector.load %arg18[%c10_67, %c0_68] : memref<16x32xf32, #tpu.memory_space<vmem>>, vector<2x32xf32>
    tpu.vector_store %arg18[%c10_67, %c0_68], %296 {strides = array<i32>} : memref<16x32xf32, #tpu.memory_space<vmem>>, vector<2x32xf32>,
    %298 = vector.extract_strided_slice %174 {offsets = [12, 0], sizes = [2, 128], strides = [1, 1]} : vector<16x128xf32> to vector<2x128xf32>
    %cst_69 = arith.constant dense<0.000000e+00> : vector<2x128xf32>
    %299 = tpu.matmul %296, %175, %cst_69 {dimension_numbers = #tpu.dot_dimension_numbers<[1], [0], [0], [1], [0, 0, 1, 1], [], []>} : vector<2x32xf32>, vector<32x128xf32>, vector<2x128xf32> -> vector<2x128xf32>
    %300 = arith.addf %298, %299 : vector<2x128xf32>
    %301 = vector.extract_strided_slice %300 {offsets = [0, 0], sizes = [2, 96], strides = [1, 1]} : vector<2x128xf32> to vector<2x96xf32>
    %302 = arith.negf %301 : vector<2x96xf32>
    %303 = math.exp %302 : vector<2x96xf32>
    %cst_70 = arith.constant 1.000000e+00 : f32
    %304 = vector.broadcast %cst_70 : f32 to vector<2x96xf32>
    %305 = arith.addf %304, %303 : vector<2x96xf32>
    %306 = arith.divf %304, %305 : vector<2x96xf32>
    %307 = vector.extract_strided_slice %300 {offsets = [0, 96], sizes = [2, 32], strides = [1, 1]} : vector<2x128xf32> to vector<2x32xf32>
    %308 = math.tanh %307 : vector<2x32xf32>
    %309 = vector.extract_strided_slice %306 {offsets = [0, 32], sizes = [2, 32], strides = [1, 1]} : vector<2x96xf32> to vector<2x32xf32>
    %310 = arith.mulf %309, %293 : vector<2x32xf32>
    %311 = vector.extract_strided_slice %306 {offsets = [0, 0], sizes = [2, 32], strides = [1, 1]} : vector<2x96xf32> to vector<2x32xf32>
    %312 = arith.mulf %311, %308 : vector<2x32xf32>
    %313 = arith.addf %310, %312 : vector<2x32xf32>
    %314 = vector.extract_strided_slice %306 {offsets = [0, 64], sizes = [2, 32], strides = [1, 1]} : vector<2x96xf32> to vector<2x32xf32>
    %315 = math.tanh %313 : vector<2x32xf32>
    %316 = arith.mulf %314, %315 : vector<2x32xf32>
    %c12_71 = arith.constant 12 : index
    %c0_72 = arith.constant 0 : index
    %317 = vector.load %arg18[%c12_71, %c0_72] : memref<16x32xf32, #tpu.memory_space<vmem>>, vector<2x32xf32>
    tpu.vector_store %arg18[%c12_71, %c0_72], %316 {strides = array<i32>} : memref<16x32xf32, #tpu.memory_space<vmem>>, vector<2x32xf32>,
    %318 = vector.extract_strided_slice %174 {offsets = [14, 0], sizes = [2, 128], strides = [1, 1]} : vector<16x128xf32> to vector<2x128xf32>
    %cst_73 = arith.constant dense<0.000000e+00> : vector<2x128xf32>
    %319 = tpu.matmul %316, %175, %cst_73 {dimension_numbers = #tpu.dot_dimension_numbers<[1], [0], [0], [1], [0, 0, 1, 1], [], []>} : vector<2x32xf32>, vector<32x128xf32>, vector<2x128xf32> -> vector<2x128xf32>
    %320 = arith.addf %318, %319 : vector<2x128xf32>
    %321 = vector.extract_strided_slice %320 {offsets = [0, 0], sizes = [2, 96], strides = [1, 1]} : vector<2x128xf32> to vector<2x96xf32>
    %322 = arith.negf %321 : vector<2x96xf32>
    %323 = math.exp %322 : vector<2x96xf32>
    %cst_74 = arith.constant 1.000000e+00 : f32
    %324 = vector.broadcast %cst_74 : f32 to vector<2x96xf32>
    %325 = arith.addf %324, %323 : vector<2x96xf32>
    %326 = arith.divf %324, %325 : vector<2x96xf32>
    %327 = vector.extract_strided_slice %320 {offsets = [0, 96], sizes = [2, 32], strides = [1, 1]} : vector<2x128xf32> to vector<2x32xf32>
    %328 = math.tanh %327 : vector<2x32xf32>
    %329 = vector.extract_strided_slice %326 {offsets = [0, 32], sizes = [2, 32], strides = [1, 1]} : vector<2x96xf32> to vector<2x32xf32>
    %330 = arith.mulf %329, %313 : vector<2x32xf32>
    %331 = vector.extract_strided_slice %326 {offsets = [0, 0], sizes = [2, 32], strides = [1, 1]} : vector<2x96xf32> to vector<2x32xf32>
    %332 = arith.mulf %331, %328 : vector<2x32xf32>
    %333 = arith.addf %330, %332 : vector<2x32xf32>
    %334 = vector.extract_strided_slice %326 {offsets = [0, 64], sizes = [2, 32], strides = [1, 1]} : vector<2x96xf32> to vector<2x32xf32>
    %335 = math.tanh %333 : vector<2x32xf32>
    %336 = arith.mulf %334, %335 : vector<2x32xf32>
    %c14_75 = arith.constant 14 : index
    %c0_76 = arith.constant 0 : index
    %337 = vector.load %arg18[%c14_75, %c0_76] : memref<16x32xf32, #tpu.memory_space<vmem>>, vector<2x32xf32>
    tpu.vector_store %arg18[%c14_75, %c0_76], %336 {strides = array<i32>} : memref<16x32xf32, #tpu.memory_space<vmem>>, vector<2x32xf32>,
    %c0_77 = arith.constant 0 : index
    %c0_78 = arith.constant 0 : index
    %338 = vector.load %arg18[%c0_77, %c0_78] : memref<16x32xf32, #tpu.memory_space<vmem>>, vector<16x32xf32>
    %c0_79 = arith.constant 0 : index
    %c0_80 = arith.constant 0 : index
    %339 = vector.load %arg8[%c0_79, %c0_80] : memref<32x32xf32, #tpu.memory_space<vmem>>, vector<32x32xf32>
    %cst_81 = arith.constant dense<0.000000e+00> : vector<16x32xf32>
    %340 = tpu.matmul %338, %339, %cst_81 {dimension_numbers = #tpu.dot_dimension_numbers<[1], [0], [0], [1], [0, 0, 1, 1], [], []>} : vector<16x32xf32>, vector<32x32xf32>, vector<16x32xf32> -> vector<16x32xf32>
    %c0_82 = arith.constant 0 : index
    %c0_83 = arith.constant 0 : index
    %341 = vector.load %arg9[%c0_82, %c0_83] : memref<1x32xf32, #tpu.memory_space<vmem>>, vector<1x32xf32>
    %342 = vector.broadcast %341 : vector<1x32xf32> to vector<16x32xf32>
    %343 = arith.addf %340, %342 : vector<16x32xf32>
    %344 = math.tanh %343 : vector<16x32xf32>
    %c0_84 = arith.constant 0 : index
    %c0_85 = arith.constant 0 : index
    %345 = vector.load %arg10[%c0_84, %c0_85] : memref<1x32xf32, #tpu.memory_space<vmem>>, vector<1x32xf32>
    %346 = vector.broadcast %345 : vector<1x32xf32> to vector<16x32xf32>
    %347 = arith.mulf %344, %346 : vector<16x32xf32>
    %cst_86 = arith.constant dense<0.000000e+00> : vector<16xf32>
    %348 = vector.multi_reduction <add>, %347, %cst_86 [1] : vector<16x32xf32> to vector<16xf32>
    %349 = vector.shape_cast %348 : vector<16xf32> to vector<16x1xf32>
    %c0_87 = arith.constant 0 : index
    %c0_88 = arith.constant 0 : index
    %350 = vector.load %arg11[%c0_87, %c0_88] : memref<1x1xf32, #tpu.memory_space<vmem>>, vector<1x1xf32>
    %351 = vector.broadcast %350 : vector<1x1xf32> to vector<16x1xf32>
    %352 = arith.addf %349, %351 : vector<16x1xf32>
    %cst_89 = arith.constant dense<0xFF800000> : vector<1xf32>
    %353 = vector.multi_reduction <maximumf>, %352, %cst_89 [0] : vector<16x1xf32> to vector<1xf32>
    %354 = vector.shape_cast %353 : vector<1xf32> to vector<1x1xf32>
    %355 = vector.broadcast %354 : vector<1x1xf32> to vector<16x1xf32>
    %356 = arith.subf %352, %355 : vector<16x1xf32>
    %357 = math.exp %356 : vector<16x1xf32>
    %c0_90 = arith.constant 0 : index
    %c0_91 = arith.constant 0 : index
    %358 = vector.load %arg1[%c0_90, %c0_91] : memref<2x16xf32, #tpu.memory_space<vmem>>, vector<2x16xf32>
    %359 = vector.broadcast %357 : vector<16x1xf32> to vector<16x32xf32>
    %360 = arith.mulf %359, %338 : vector<16x32xf32>
    %cst_92 = arith.constant dense<0.000000e+00> : vector<2x32xf32>
    %361 = tpu.matmul %358, %360, %cst_92 {dimension_numbers = #tpu.dot_dimension_numbers<[1], [0], [0], [1], [0, 0, 1, 1], [], []>} : vector<2x16xf32>, vector<16x32xf32>, vector<2x32xf32> -> vector<2x32xf32>
    %cst_93 = arith.constant dense<0.000000e+00> : vector<2x1xf32>
    %362 = tpu.matmul %358, %357, %cst_93 {dimension_numbers = #tpu.dot_dimension_numbers<[1], [0], [0], [1], [0, 0, 1, 1], [], []>} : vector<2x16xf32>, vector<16x1xf32>, vector<2x1xf32> -> vector<2x1xf32>
    %363 = tpu.reciprocal %362 {approx = true} : vector<2x1xf32> -> vector<2x1xf32>
    %364 = vector.broadcast %363 : vector<2x1xf32> to vector<2x32xf32>
    %365 = arith.mulf %361, %364 : vector<2x32xf32>
    %c0_94 = arith.constant 0 : index
    %c0_95 = arith.constant 0 : index
    %366 = vector.load %arg12[%c0_94, %c0_95] : memref<32x16xf32, #tpu.memory_space<vmem>>, vector<32x16xf32>
    %cst_96 = arith.constant dense<0.000000e+00> : vector<2x16xf32>
    %367 = tpu.matmul %365, %366, %cst_96 {dimension_numbers = #tpu.dot_dimension_numbers<[1], [0], [0], [1], [0, 0, 1, 1], [], []>} : vector<2x32xf32>, vector<32x16xf32>, vector<2x16xf32> -> vector<2x16xf32>
    %c0_97 = arith.constant 0 : index
    %c0_98 = arith.constant 0 : index
    %368 = vector.load %arg13[%c0_97, %c0_98] : memref<1x16xf32, #tpu.memory_space<vmem>>, vector<1x16xf32>
    %369 = vector.broadcast %368 : vector<1x16xf32> to vector<2x16xf32>
    %370 = arith.addf %367, %369 : vector<2x16xf32>
    %cst_99 = arith.constant 0.000000e+00 : f32
    %371 = vector.broadcast %cst_99 : f32 to vector<2x16xf32>
    %372 = arith.maximumf %370, %371 : vector<2x16xf32>
    %c0_100 = arith.constant 0 : index
    %c0_101 = arith.constant 0 : index
    %373 = vector.load %arg14[%c0_100, %c0_101] : memref<16x3xf32, #tpu.memory_space<vmem>>, vector<16x3xf32>
    %cst_102 = arith.constant dense<0.000000e+00> : vector<2x3xf32>
    %374 = tpu.matmul %372, %373, %cst_102 {dimension_numbers = #tpu.dot_dimension_numbers<[1], [0], [0], [1], [0, 0, 1, 1], [], []>} : vector<2x16xf32>, vector<16x3xf32>, vector<2x3xf32> -> vector<2x3xf32>
    %c0_103 = arith.constant 0 : index
    %c0_104 = arith.constant 0 : index
    %375 = vector.load %arg15[%c0_103, %c0_104] : memref<1x3xf32, #tpu.memory_space<vmem>>, vector<1x3xf32>
    %376 = vector.broadcast %375 : vector<1x3xf32> to vector<2x3xf32>
    %377 = arith.addf %374, %376 : vector<2x3xf32>
    %c0_105 = arith.constant 0 : index
    %c0_106 = arith.constant 0 : index
    %378 = vector.load %arg16[%c0_105, %c0_106] : memref<2x3xf32, #tpu.memory_space<vmem>>, vector<2x3xf32>
    tpu.vector_store %arg16[%c0_105, %c0_106], %377 {strides = array<i32>} : memref<2x3xf32, #tpu.memory_space<vmem>>, vector<2x3xf32>,
    return
  }
}

</mosaic_0001>

<bundles_post_ra>
// kernel: hybrid_forward.1
= control target key start
LH: loop header
LB: loop body
LE: loop exit
PB: predicated region body
PF: predicated region fallthrough
CT: control target
= control target key end

     0   :  { %s3895_s0 = inlined_call_operand.vmem [shape: f32[16,4], index: 0, kind: input, shape index: {}]   ;;  %s3896_s1 = inlined_call_operand.vmem [shape: f32[2,16], index: 1, kind: input, shape index: {}]   ;;  %s3897_s2 = inlined_call_operand.hbm [shape: f32[4,128], index: 2, kind: input, shape index: {}]   ;;  %s3898_s3 = inlined_call_operand.vmem [shape: f32[32,128], index: 3, kind: input, shape index: {}]   ;;  %s3899_s4 = inlined_call_operand.hbm [shape: f32[1,128], index: 4, kind: input, shape index: {}]   ;;  %s3900_s5 = inlined_call_operand.vmem [shape: f32[32,128], index: 5, kind: input, shape index: {}]   ;;  %s3901_s6 = inlined_call_operand.vmem [shape: f32[32,128], index: 6, kind: input, shape index: {}]   ;;  %s3902_s7 = inlined_call_operand.hbm [shape: f32[1,128], index: 7, kind: input, shape index: {}]   ;;  %s3903_s8 = inlined_call_operand.vmem [shape: f32[32,32], index: 8, kind: input, shape index: {}]   ;;  %s3904_s9 = inlined_call_operand.hbm [shape: f32[1,32], index: 9, kind: input, shape index: {}]   ;;  %s3905_s10 = inlined_call_operand.hbm [shape: f32[1,32], index: 10, kind: input, shape index: {}]   ;;  %s3906_s11 = inlined_call_operand.<no memory space> [shape: f32[1,1], index: 11, kind: input, shape index: {}]   ;;  %s3907_s12 = inlined_call_operand.vmem [shape: f32[32,16], index: 12, kind: input, shape index: {}]   ;;  %s3908_s13 = inlined_call_operand.vmem [shape: f32[1,16], index: 13, kind: input, shape index: {}]   ;;  %s3909_s14 = inlined_call_operand.vmem [shape: f32[16,3], index: 14, kind: input, shape index: {}]   ;;  %s3910_s15 = inlined_call_operand.vmem [shape: f32[1,3], index: 15, kind: input, shape index: {}]   ;;  %s3911_s16 = inlined_call_operand.hbm [shape: f32[2,3], index: 16, kind: output, shape index: {}]  }
   0x1   :  { %3913 = sst [smem:[#allocation19_spill]] %s3895_s0  ;;  %v21_v0 = vstv %s3906_s11 }
   0x2   :  { %22 = vst [vmem:[#allocation4] sm:$0x1] %v21_v0 }
   0x3   :  { %23 = vsyncpa [#allocation6], 0 }
   0x4   :  { %24 = vsyncpa [#allocation9], 0 }
   0x5   :  { %25 = vsyncpa [#allocation12], 0 }
   0x6   :  { %26 = vsyncpa [#allocation7], 0  ;;  %s3353_s23 = smov [#allocation8]   ;;  %s3354_s25 = smov [#allocation11]  }
   0x7   :  { %s49_s24 = sshll.u32 %s3353_s23, 4  ;;  %s75_s26 = sshll.u32 %s3354_s25, 4  ;;  %s50_s24 = int_to_ptr.vmem [resolvable:$true] %s49_s24  ;;  %s76_s26 = int_to_ptr.vmem [resolvable:$true] %s75_s26 }
   0x8   :  { %s3213_s29 = scalar_lea.hbm %s3899_s4, 16 }
   0x9   :  { %p3214_p0 = scmp.ne.s32.totalorder %s3899_s4, %s3213_s29  ;;  %p3217_p1 = scmp.lt.u32.totalorder %s3213_s29, %s3899_s4 }
   0xb   :  { %p3219_p2 = pnand %p3217_p1, %p3214_p0 }
   0xd   :  { %3222 = shalt.err (!%p3219_p2)
}
   0xe   :  { %s3223_s18 = scalar_lea.vmem %s50_s24, 16  ;;  %s3227_s19 = scalar_lea.vmem %s50_s24, 32 }
   0xf   :  { %p3224_p3 = scmp.ne.s32.totalorder %s50_s24, %s3223_s18  ;;  %p3228_p4 = scmp.lt.s32.totalorder %s50_s24, %s50_s24 }
  0x10   :  { %p3229_p5 = scmp.lt.s32.totalorder %s3227_s19, %s3223_s18 }
  0x12   :  { %p3230_p6 = por %p3229_p5, %p3228_p4 }
  0x14   :  { %p3231_p7 = pnand %p3230_p6, %p3224_p3 }
  0x16   :  { %3234 = shalt.err (!%p3231_p7)
}
  0x17   :  { %52 = dma.hbm_to_vmem [thread:$0]  %s3899_s4, 16, %s50_s24, [#allocation9]  }
  0x18   :  { %s3235_s25 = scalar_lea.hbm %s3904_s9, 16 }
  0x19   :  { %p3236_p8 = scmp.ne.s32.totalorder %s3904_s9, %s3235_s25  ;;  %p3239_p9 = scmp.lt.u32.totalorder %s3235_s25, %s3904_s9 }
  0x1b   :  { %p3241_p10 = pnand %p3239_p9, %p3236_p8 }
  0x1d   :  { %3244 = shalt.err (!%p3241_p10)
}
  0x1e   :  { %s3245_s0 = scalar_lea.vmem %s76_s26, 16  ;;  %s3249_s11 = scalar_lea.vmem %s76_s26, 32 }
  0x1f   :  { %p3246_p11 = scmp.ne.s32.totalorder %s76_s26, %s3245_s0  ;;  %p3250_p12 = scmp.lt.s32.totalorder %s76_s26, %s76_s26 }
  0x20   :  { %p3251_p13 = scmp.lt.s32.totalorder %s3249_s11, %s3245_s0 }
  0x22   :  { %p3252_p0 = por %p3251_p13, %p3250_p12 }
  0x24   :  { %p3253_p1 = pnand %p3252_p0, %p3246_p11 }
  0x26   :  { %3256 = shalt.err (!%p3253_p1)
}
  0x27   :  { %78 = dma.hbm_to_vmem [thread:$0]  %s3904_s9, 16, %s76_s26, [#allocation12]  }
  0x28   :  { %s3355_s17 = smov [#allocation5]   ;;  %s3356_s19 = smov [#allocation10]  }
  0x29   :  { %s37_s18 = sshll.u32 %s3355_s17, 4  ;;  %s63_s20 = sshll.u32 %s3356_s19, 4  ;;  %s38_s18 = int_to_ptr.vmem [resolvable:$true] %s37_s18  ;;  %s64_s20 = int_to_ptr.vmem [resolvable:$true] %s63_s20 }
  0x2a   :  { %s3257_s23 = scalar_lea.hbm %s3897_s2, 64 }
  0x2b   :  { %p3258_p2 = scmp.ne.s32.totalorder %s3897_s2, %s3257_s23  ;;  %p3261_p3 = scmp.lt.u32.totalorder %s3257_s23, %s3897_s2 }
  0x2d   :  { %p3263_p4 = pnand %p3261_p3, %p3258_p2 }
  0x2f   :  { %3266 = shalt.err (!%p3263_p4)
}
  0x30   :  { %s3267_s9 = scalar_lea.vmem %s38_s18, 64  ;;  %p3272_p6 = scmp.lt.s32.totalorder %s38_s18, %s38_s18 }
  0x31   :  { %p3268_p5 = scmp.ne.s32.totalorder %s38_s18, %s3267_s9  ;;  %p3273_p7 = scmp.lt.s32.totalorder %s3267_s9, %s3267_s9 }
  0x33   :  { %p3274_p8 = por %p3273_p7, %p3272_p6 }
  0x35   :  { %p3275_p9 = pnand %p3274_p8, %p3268_p5 }
  0x37   :  { %3278 = shalt.err (!%p3275_p9)
}
  0x38   :  { %40 = dma.hbm_to_vmem [thread:$0]  %s3897_s2, 64, %s38_s18, [#allocation6]  }
  0x39   :  { %s3279_s4 = scalar_lea.hbm %s3902_s7, 16 }
  0x3a   :  { %p3280_p10 = scmp.ne.s32.totalorder %s3902_s7, %s3279_s4  ;;  %p3283_p11 = scmp.lt.u32.totalorder %s3279_s4, %s3902_s7 }
  0x3c   :  { %p3285_p12 = pnand %p3283_p11, %p3280_p10 }
  0x3e   :  { %3288 = shalt.err (!%p3285_p12)
}
  0x3f   :  { %s3289_s22 = scalar_lea.vmem %s64_s20, 16  ;;  %s3293_s23 = scalar_lea.vmem %s64_s20, 32 }
  0x40   :  { %p3290_p13 = scmp.ne.s32.totalorder %s64_s20, %s3289_s22  ;;  %p3294_p0 = scmp.lt.s32.totalorder %s64_s20, %s64_s20 }
  0x41   :  { %p3295_p1 = scmp.lt.s32.totalorder %s3293_s23, %s3289_s22 }
  0x43   :  { %p3296_p2 = por %p3295_p1, %p3294_p0 }
  0x45   :  { %p3297_p3 = pnand %p3296_p2, %p3290_p13 }
  0x47   :  { %3300 = shalt.err (!%p3297_p3)
}
  0x48   :  { %66 = dma.hbm_to_vmem [thread:$0]  %s3902_s7, 16, %s64_s20, [#allocation9]  }
  0x49   :  { %s3357_s25 = smov [#allocation13]   ;;  %s3301_s9 = scalar_lea.hbm %s3905_s10, 16 }
  0x4a   :  { %s85_s27 = sshll.u32 %s3357_s25, 4  ;;  %p3302_p4 = scmp.ne.s32.totalorder %s3905_s10, %s3301_s9  ;;  %s86_s27 = int_to_ptr.vmem [resolvable:$true] %s85_s27 }
  0x4b   :  { %p3305_p5 = scmp.lt.u32.totalorder %s3301_s9, %s3905_s10 }
  0x4d   :  { %p3307_p6 = pnand %p3305_p5, %p3302_p4 }
  0x4f   :  { %3310 = shalt.err (!%p3307_p6)
}
  0x50   :  { %s3311_s4 = scalar_lea.vmem %s86_s27, 16  ;;  %s3315_s7 = scalar_lea.vmem %s86_s27, 32 }
  0x51   :  { %p3312_p7 = scmp.ne.s32.totalorder %s86_s27, %s3311_s4  ;;  %p3316_p8 = scmp.lt.s32.totalorder %s86_s27, %s86_s27 }
  0x52   :  { %p3317_p9 = scmp.lt.s32.totalorder %s3315_s7, %s3311_s4 }
  0x54   :  { %p3318_p10 = por %p3317_p9, %p3316_p8 }
  0x56   :  { %p3319_p11 = pnand %p3318_p10, %p3312_p7 }
  0x58   :  { %3322 = shalt.err (!%p3319_p11)
}
  0x59   :  { %88 = dma.hbm_to_vmem [thread:$0]  %s3905_s10, 16, %s86_s27, [#allocation12]  }
  0x5a   :  { %3345 = dma.done.wait [#allocation6], 64  }
  0x5b   :  { %3346 = vsyncadd [#allocation6], 4294967232 }
  0x5c   :  { %3347 = dma.done.wait [#allocation9], 32  }
  0x5d   :  { %3348 = vsyncadd [#allocation9], 4294967264 }
  0x5e   :  { %3349 = dma.done.wait [#allocation12], 32  }
  0x5f   :  { %3350 = vsyncadd [#allocation12], 4294967264  ;;  %v3358_v1 = vmov 0.0|0.0   ;;  %vm3359_vm0 = vmmov 0   ;;  %v3360_v2 = vmov 0.0   ;;  %vm131_vm1 = vcmask 1043456  }
  0x60   :  { %2934 = vmatprep.subr.bf16.mxu1 %v3358_v1  ;;  %2712 = vmatprep.mubr.msk.f32.mxu1 %vm3359_vm0, %v3360_v2  ;;  %vm124_vm2 = vcmask 31744   ;;  %v210_v3 = vld [vmem:[%s3898_s3] sm:$0xff]  ;;  %v211_v4 = vld [vmem:[%s3898_s3 + $0x8] sm:$0xff]  ;;  %s3914_s2 = sld [smem:[#allocation19_spill]]  ;;  %v212_v9 = vld [vmem:[%s3898_s3 + $0x10] sm:$0xff]  ;;  %s3362_s26 = smov 64  }
  0x61   :  { %v116_v5 = vld [vmem:[#allocation5] sm:$0xf]  ;;  %v3522_v6 = vpack.c.bf16 %v211_v4, %v210_v3  ;;  %v213_v10 = vld [vmem:[%s3898_s3 + $0x18] sm:$0xff]  ;;  %v2542_v12 = vld [vmem:[#allocation8] ss:$0 sm:$0xff]  ;;  %s3361_s3 = smov 32  }
  0x62   :  { %2699 = vmatprep.subr.msk.mxu0 %vm131_vm1, %v116_v5  ;;  %v3537_v11 = vpack.c.bf16 %v213_v10, %v212_v9  ;;  %vm317_vm3 = vcmask 254976   ;;  %vm214_vm4 = vcmask 261120   ;;  %vm426_vm5 = vcmask 257026   ;;  %s3364_s25 = smov [#allocation14]  }
  0x63   :  { %2700 = vmatpush3.msk.msra.mxu0 %vm131_vm1, %v116_v5  ;;  %2936 = vmatpush3.bf16.msra.mxu1 %v3522_v6  ;;  %vm650_vm6 = vcmask 261126   ;;  %vm538_vm7 = vcmask 259076   ;;  %vm2176_vm8 = vcmask 7168   ;;  %vm2205_vm9 = vcmask 130048  }
  0x64   :  { %2937 = vmatprep.subr.bf16.mxu1 %v3358_v1  ;;  %2940 = vmatprep.subr.bf16.mxu0 %v3358_v1  ;;  %vm2523_vm10 = vcmask 17408  }
  0x66   :  { %v114_v7 = vld [vmem:[%s3914_s2] sm:$0xff]  ;;  %v115_v8 = vld [vmem:[%s3914_s2 + $0x8] sm:$0xff] }
  0x67   :  { %2701 = vmatprep.mubr.msk.f32.mxu0 %vm124_vm2, %v114_v7  ;;  %2939 = vmatpush3.bf16.msra.mxu1 %v3537_v11 }
  0x68   :  { %2702 = vmatmul.mubr.msk.f32.vlgmr.msra.gmra.mrb[0].mxu0 %vm124_vm2, %v115_v8  ;;  %2946 = vmatprep.subr.bf16.mxu1 %v3358_v1 }
  0x69   :  { %2942 = vmatpush3.bf16.msra.mxu0 %v3522_v6  ;;  %2723 = vmatprep.mubr.msk.f32.mxu0 %vm3359_vm0, %v3360_v2 }
  0x6a   :  { %2943 = vmatprep.subr.bf16.mxu0 %v3358_v1  ;;  %2713 = vmatmul.mubr.f32.vlgmr.msra.gmra.mrb[0].mxu1 %v3360_v2 }
  0x6b   :  { %2948 = vmatpush3.bf16.msra.mxu1 %v3522_v6  ;;  %2734 = vmatprep.mubr.msk.f32.mxu1 %vm3359_vm0, %v3360_v2 }
  0x6c   :  { %2949 = vmatprep.subr.bf16.mxu1 %v3358_v1 }
  0x6d   :  { %2945 = vmatpush3.bf16.msra.mxu0 %v3537_v11 }
  0x6e   :  { %2952 = vmatprep.subr.bf16.mxu0 %v3358_v1 }
  0x6f   :  { %2951 = vmatpush3.bf16.msra.mxu1 %v3537_v11 }
  0x70   :  { %2958 = vmatprep.subr.bf16.mxu1 %v3358_v1 }
 0x13b   :  { %v2703_v13 = vpop.f32.mrb[0].mxu0 }
 0x13c   :  { %v3556_v14 = vadd.f32 %v2703_v13, %v2542_v12  ;;  %v201_v15 = vpop.f32.mrb[1].mxu0 }
 0x13d   :  { %v3558_v16 = vadd.f32 %v2542_v12, %v201_v15  ;;  %v284_v17 = vpop.f32.mrb[0].mxu1 }
 0x13e   :  { %v2714_v19 = vpop.f32.mrb[1].mxu1 }
 0x13f   :  { %v288_v18 = vadd.f32 %v284_v17, %v3558_v16 }
 0x141   :  { %3075 = vtanh.f32 %v288_v18  ;;  %v2546_v21 = vmul.f32 -1.442695, %v288_v18 }
 0x143   :  { %3077 = vpow2.f32 %v2546_v21 }
 0x14b   :  { %v3076_v20 = vpop.eup %3075 }
 0x14c   :  { %298 = vrot.lane.b32.xlu0 %v3076_v20, %s3361_s3 }
 0x14d   :  { %v3078_v22 = vpop.eup %3077 }
 0x14e   :  { %v292_v23 = vadd.f32 1.0, %v3078_v22 }
 0x150   :  { %3079 = vrcp.f32 %v292_v23 }
 0x15a   :  { %v3080_v24 = vpop.eup %3079 }
 0x15b   :  { %v296_v27 = vmul.f32 0.0, %v3080_v24 }
 0x1be   :  { %v299_v25 = vpop.permute.xlu0 %298 }
 0x1bf   :  { %v301_v26 = vmul.f32 %v3080_v24, %v299_v25 }
 0x1c1   :  { %303 = vrot.lane.b32.xlu0 %v301_v26, %s3361_s3 }
 0x233   :  { %v304_v28 = vpop.permute.xlu0 %303 }
 0x234   :  { %v306_v29 = vadd.f32 %v304_v28, %v296_v27 }
 0x236   :  { %3081 = vtanh.f32 %v306_v29  ;;  %v403_v45 = vrot.slane %v306_v29, 6 }
 0x240   :  { %v3082_v30 = vpop.eup %3081 }
 0x241   :  { %309 = vrot.lane.b32.xlu1 %v3082_v30, %s3361_s3 }
 0x2b3   :  { %v310_v31 = vpop.permute.xlu1 %309 }
 0x2b4   :  { %v312_v32 = vmul.f32 %v3080_v24, %v310_v31 }
 0x2b6   :  { %314 = vrot.lane.b32.xlu1 %v312_v32, %s3362_s26 }
 0x328   :  { %v315_v33 = vpop.permute.xlu1 %314 }
 0x329   :  { %318 = vst.msk [vmem:[#allocation2] sm:$0x3] %vm317_vm3, %v315_v33  ;;  %2724 = vmatmul.mubr.msk.f32.vlgmr.msra.gmra.mrb[2].mxu0 %vm214_vm4, %v315_v33 }
 0x32a   :  { %2954 = vmatpush3.bf16.msra.mxu0 %v3522_v6  ;;  %2745 = vmatprep.mubr.msk.f32.mxu0 %vm3359_vm0, %v3360_v2 }
 0x32b   :  { %2955 = vmatprep.subr.bf16.mxu0 %v3358_v1 }
 0x32e   :  { %2957 = vmatpush3.bf16.msra.mxu0 %v3537_v11 }
 0x32f   :  { %2964 = vmatprep.subr.bf16.mxu0 %v3358_v1 }
 0x3fc   :  { %v387_v34 = vpop.f32.mrb[2].mxu0 }
 0x3fd   :  { %v392_v35 = vrot.slane %v387_v34, 6  ;;  %v2725_v36 = vpop.f32.mrb[3].mxu0 }
 0x3ff   :  { %v394_v37 = vadd.f32 %v392_v35, %v3558_v16 }
 0x401   :  { %3083 = vtanh.f32 %v394_v37  ;;  %v2548_v39 = vmul.f32 -1.442695, %v394_v37 }
 0x403   :  { %3085 = vpow2.f32 %v2548_v39 }
 0x40b   :  { %v3084_v38 = vpop.eup %3083 }
 0x40c   :  { %407 = vrot.lane.b32.xlu0 %v3084_v38, %s3361_s3 }
 0x40d   :  { %v3086_v40 = vpop.eup %3085 }
 0x40e   :  { %v398_v41 = vadd.f32 1.0, %v3086_v40 }
 0x410   :  { %3087 = vrcp.f32 %v398_v41 }
 0x41a   :  { %v3088_v42 = vpop.eup %3087 }
 0x41b   :  { %v405_v46 = vmul.f32 %v3088_v42, %v403_v45 }
 0x47e   :  { %v408_v43 = vpop.permute.xlu0 %407 }
 0x47f   :  { %v410_v44 = vmul.f32 %v3088_v42, %v408_v43 }
 0x481   :  { %412 = vrot.lane.b32.xlu1 %v410_v44, %s3361_s3 }
 0x4f3   :  { %v413_v47 = vpop.permute.xlu1 %412 }
 0x4f4   :  { %v415_v48 = vadd.f32 %v413_v47, %v405_v46 }
 0x4f6   :  { %3089 = vtanh.f32 %v415_v48  ;;  %v515_v3 = vrot.slane %v415_v48, 6 }
 0x500   :  { %v3090_v49 = vpop.eup %3089 }
 0x501   :  { %418 = vrot.lane.b32.xlu0 %v3090_v49, %s3361_s3 }
 0x573   :  { %v419_v50 = vpop.permute.xlu0 %418 }
 0x574   :  { %v3577_v51 = vmul.f32 %v3088_v42, %v419_v50 }
 0x576   :  { %v428_v52 = vrot.slane %v3577_v51, 2 }
 0x578   :  { %429 = vrot.lane.b32.xlu1 %v428_v52, %s3362_s26 }
 0x5ea   :  { %v430_v53 = vpop.permute.xlu1 %429 }
 0x5eb   :  { %2735 = vmatmul.mubr.msk.f32.vlgmr.msra.gmra.mrb[2].mxu1 %vm214_vm4, %v430_v53 }
 0x5ec   :  { %2960 = vmatpush3.bf16.msra.mxu1 %v3522_v6  ;;  %2756 = vmatprep.mubr.msk.f32.mxu1 %vm3359_vm0, %v3360_v2 }
 0x5ed   :  { %2961 = vmatprep.subr.bf16.mxu1 %v3358_v1 }
 0x5f0   :  { %2963 = vmatpush3.bf16.msra.mxu1 %v3537_v11 }
 0x5f1   :  { %2970 = vmatprep.subr.bf16.mxu1 %v3358_v1 }
 0x6be   :  { %v499_v54 = vpop.f32.mrb[2].mxu1 }
 0x6bf   :  { %v504_v55 = vrot.slane %v499_v54, 4  ;;  %v2736_v56 = vpop.f32.mrb[3].mxu1 }
 0x6c1   :  { %v506_v57 = vadd.f32 %v504_v55, %v3558_v16 }
 0x6c3   :  { %3091 = vtanh.f32 %v506_v57  ;;  %v2550_v59 = vmul.f32 -1.442695, %v506_v57 }
 0x6c5   :  { %3093 = vpow2.f32 %v2550_v59 }
 0x6cd   :  { %v3092_v58 = vpop.eup %3091 }
 0x6ce   :  { %519 = vrot.lane.b32.xlu0 %v3092_v58, %s3361_s3 }
 0x6cf   :  { %v3094_v60 = vpop.eup %3093 }
 0x6d0   :  { %v510_v61 = vadd.f32 1.0, %v3094_v60 }
 0x6d2   :  { %3095 = vrcp.f32 %v510_v61 }
 0x6dc   :  { %v3096_v62 = vpop.eup %3095 }
 0x6dd   :  { %v517_v4 = vmul.f32 %v3096_v62, %v515_v3 }
 0x740   :  { %v520_v63 = vpop.permute.xlu0 %519 }
 0x741   :  { %v522_v0 = vmul.f32 %v3096_v62, %v520_v63 }
 0x743   :  { %524 = vrot.lane.b32.xlu1 %v522_v0, %s3361_s3 }
 0x7b5   :  { %v525_v5 = vpop.permute.xlu1 %524 }
 0x7b6   :  { %v527_v7 = vadd.f32 %v525_v5, %v517_v4 }
 0x7b8   :  { %3097 = vtanh.f32 %v527_v7  ;;  %v627_v27 = vrot.slane %v527_v7, 6 }
 0x7c2   :  { %v3098_v8 = vpop.eup %3097 }
 0x7c3   :  { %530 = vrot.lane.b32.xlu0 %v3098_v8, %s3361_s3 }
 0x835   :  { %v531_v9 = vpop.permute.xlu0 %530 }
 0x836   :  { %v3592_v10 = vmul.f32 %v3096_v62, %v531_v9 }
 0x838   :  { %v540_v12 = vrot.slane %v3592_v10, 4 }
 0x83a   :  { %541 = vrot.lane.b32.xlu1 %v540_v12, %s3362_s26 }
 0x8ac   :  { %v542_v13 = vpop.permute.xlu1 %541 }
 0x8ad   :  { %2746 = vmatmul.mubr.msk.f32.vlgmr.msra.gmra.mrb[4].mxu0 %vm214_vm4, %v542_v13 }
 0x8ae   :  { %2966 = vmatpush3.bf16.msra.mxu0 %v3522_v6  ;;  %2767 = vmatprep.mubr.msk.f32.mxu0 %vm3359_vm0, %v3360_v2 }
 0x8af   :  { %2967 = vmatprep.subr.bf16.mxu0 %v3358_v1 }
 0x8b2   :  { %2969 = vmatpush3.bf16.msra.mxu0 %v3537_v11 }
 0x8b3   :  { %2976 = vmatprep.subr.bf16.mxu0 %v3358_v1 }
 0x980   :  { %v611_v15 = vpop.f32.mrb[4].mxu0 }
 0x981   :  { %v616_v17 = vrot.slane %v611_v15, 2  ;;  %v2747_v18 = vpop.f32.mrb[5].mxu0 }
 0x983   :  { %v618_v19 = vadd.f32 %v616_v17, %v3558_v16 }
 0x985   :  { %3099 = vtanh.f32 %v618_v19  ;;  %v2552_v21 = vmul.f32 -1.442695, %v618_v19 }
 0x987   :  { %3101 = vpow2.f32 %v2552_v21 }
 0x98f   :  { %v3100_v20 = vpop.eup %3099 }
 0x990   :  { %631 = vrot.lane.b32.xlu0 %v3100_v20, %s3361_s3 }
 0x991   :  { %v3102_v22 = vpop.eup %3101 }
 0x992   :  { %v622_v23 = vadd.f32 1.0, %v3102_v22 }
 0x994   :  { %3103 = vrcp.f32 %v622_v23 }
 0x99e   :  { %v3104_v24 = vpop.eup %3103 }
 0x99f   :  { %v629_v28 = vmul.f32 %v3104_v24, %v627_v27 }
 0xa02   :  { %v632_v25 = vpop.permute.xlu0 %631 }
 0xa03   :  { %v634_v26 = vmul.f32 %v3104_v24, %v632_v25 }
 0xa05   :  { %636 = vrot.lane.b32.xlu1 %v634_v26, %s3361_s3 }
 0xa77   :  { %v637_v29 = vpop.permute.xlu1 %636 }
 0xa78   :  { %v639_v30 = vadd.f32 %v637_v29, %v629_v28 }
 0xa7a   :  { %3105 = vtanh.f32 %v639_v30  ;;  %v736_v45 = vrot.slane %v639_v30, 6 }
 0xa84   :  { %v3106_v16 = vpop.eup %3105 }
 0xa85   :  { %642 = vrot.lane.b32.xlu0 %v3106_v16, %s3361_s3 }
 0xaf7   :  { %v643_v31 = vpop.permute.xlu0 %642 }
 0xaf8   :  { %v3607_v32 = vmul.f32 %v3104_v24, %v643_v31 }
 0xafa   :  { %v652_v33 = vrot.slane %v3607_v32, 6 }
 0xafc   :  { %653 = vrot.lane.b32.xlu1 %v652_v33, %s3362_s26 }
 0xb6e   :  { %v654_v34 = vpop.permute.xlu1 %653 }
 0xb6f   :  { %2757 = vmatmul.mubr.msk.f32.vlgmr.msra.gmra.mrb[4].mxu1 %vm214_vm4, %v654_v34 }
 0xb70   :  { %2972 = vmatpush3.bf16.msra.mxu1 %v3522_v6  ;;  %2778 = vmatprep.mubr.msk.f32.mxu1 %vm3359_vm0, %v3360_v2 }
 0xb71   :  { %2973 = vmatprep.subr.bf16.mxu1 %v3358_v1 }
 0xb74   :  { %2975 = vmatpush3.bf16.msra.mxu1 %v3537_v11 }
 0xc42   :  { %v723_v35 = vpop.f32.mrb[4].mxu1 }
 0xc43   :  { %v727_v36 = vadd.f32 %v723_v35, %v3556_v14  ;;  %v2758_v37 = vpop.f32.mrb[5].mxu1 }
 0xc45   :  { %3107 = vtanh.f32 %v727_v36  ;;  %v2554_v39 = vmul.f32 -1.442695, %v727_v36 }
 0xc47   :  { %3109 = vpow2.f32 %v2554_v39 }
 0xc4f   :  { %v3108_v38 = vpop.eup %3107 }
 0xc50   :  { %740 = vrot.lane.b32.xlu0 %v3108_v38, %s3361_s3 }
 0xc51   :  { %v3110_v40 = vpop.eup %3109 }
 0xc52   :  { %v731_v41 = vadd.f32 1.0, %v3110_v40 }
 0xc54   :  { %3111 = vrcp.f32 %v731_v41 }
 0xc5e   :  { %v3112_v42 = vpop.eup %3111 }
 0xc5f   :  { %v738_v46 = vmul.f32 %v3112_v42, %v736_v45 }
 0xcc2   :  { %v741_v43 = vpop.permute.xlu0 %740 }
 0xcc3   :  { %v743_v44 = vmul.f32 %v3112_v42, %v741_v43 }
 0xcc5   :  { %745 = vrot.lane.b32.xlu1 %v743_v44, %s3361_s3 }
 0xd37   :  { %v746_v47 = vpop.permute.xlu1 %745 }
 0xd38   :  { %v748_v48 = vadd.f32 %v746_v47, %v738_v46 }
 0xd3a   :  { %3113 = vtanh.f32 %v748_v48 }
 0xd44   :  { %v3114_v49 = vpop.eup %3113 }
 0xd45   :  { %751 = vrot.lane.b32.xlu0 %v3114_v49, %s3361_s3 }
 0xdb7   :  { %v752_v50 = vpop.permute.xlu0 %751 }
 0xdb8   :  { %v754_v52 = vmul.f32 %v3112_v42, %v752_v50 }
 0xdba   :  { %756 = vrot.lane.b32.xlu1 %v754_v52, %s3362_s26 }
 0xe2c   :  { %v757_v53 = vpop.permute.xlu1 %756 }
 0xe2d   :  { %759 = vst.msk [vmem:[#allocation2 + $0x8] sm:$0x3] %vm317_vm3, %v757_v53  ;;  %2768 = vmatmul.mubr.msk.f32.vlgmr.msra.gmra.mrb[6].mxu0 %vm214_vm4, %v757_v53  ;;  %v1093_v53 = vld [vmem:[%s3900_s5 + $0x8] sm:$0xff] }
 0xe2e   :  { %2978 = vmatpush3.bf16.msra.mxu0 %v3522_v6  ;;  %2789 = vmatprep.mubr.msk.f32.mxu0 %vm3359_vm0, %v3360_v2 }
 0xe2f   :  { %2979 = vmatprep.subr.bf16.mxu0 %v3358_v1 }
 0xe32   :  { %2981 = vmatpush3.bf16.msra.mxu0 %v3537_v11  ;;  %v844_v11 = vrot.slane %v748_v48, 6 }
 0xe33   :  { %2990 = vmatprep.subr.bf16.mxu0 %v3358_v1 }
 0xf00   :  { %v828_v54 = vpop.f32.mrb[6].mxu0 }
 0xf01   :  { %v833_v55 = vrot.slane %v828_v54, 6  ;;  %v2769_v56 = vpop.f32.mrb[7].mxu0 }
 0xf02   :  { %v1094_v56 = vld [vmem:[%s3900_s5 + $0x10] sm:$0xff] }
 0xf03   :  { %v835_v57 = vadd.f32 %v833_v55, %v3556_v14  ;;  %v1184_v55 = vld [vmem:[%s3901_s6] sm:$0xff] }
 0xf05   :  { %3115 = vtanh.f32 %v835_v57  ;;  %v2556_v59 = vmul.f32 -1.442695, %v835_v57 }
 0xf07   :  { %3117 = vpow2.f32 %v2556_v59  ;;  %v1186_v59 = vld [vmem:[%s3901_s6 + $0x10] sm:$0xff] }
 0xf0f   :  { %v3116_v58 = vpop.eup %3115 }
 0xf10   :  { %848 = vrot.lane.b32.xlu0 %v3116_v58, %s3361_s3  ;;  %v1095_v58 = vld [vmem:[%s3900_s5 + $0x18] sm:$0xff] }
 0xf11   :  { %v3118_v6 = vpop.eup %3117 }
 0xf12   :  { %v839_v60 = vadd.f32 1.0, %v3118_v6  ;;  %v1187_v6 = vld [vmem:[%s3901_s6 + $0x18] sm:$0xff] }
 0xf14   :  { %3119 = vrcp.f32 %v839_v60  ;;  %v2986_v60 = vpack.c.bf16 %v1095_v58, %v1094_v56 }
 0xf1e   :  { %v3120_v61 = vpop.eup %3119 }
 0xf1f   :  { %v846_v0 = vmul.f32 %v3120_v61, %v844_v11 }
 0xf82   :  { %v849_v62 = vpop.permute.xlu0 %848 }
 0xf83   :  { %v851_v63 = vmul.f32 %v3120_v61, %v849_v62 }
 0xf85   :  { %853 = vrot.lane.b32.xlu1 %v851_v63, %s3361_s3 }
 0xff7   :  { %v854_v3 = vpop.permute.xlu1 %853 }
 0xff8   :  { %v856_v4 = vadd.f32 %v854_v3, %v846_v0 }
 0xffa   :  { %3121 = vtanh.f32 %v856_v4  ;;  %v955_v26 = vrot.slane %v856_v4, 6 }
0x1004   :  { %v3122_v5 = vpop.eup %3121 }
0x1005   :  { %859 = vrot.lane.b32.xlu0 %v3122_v5, %s3361_s3 }
0x1077   :  { %v860_v7 = vpop.permute.xlu0 %859 }
0x1078   :  { %v3634_v8 = vmul.f32 %v3120_v61, %v860_v7  ;;  %v3690_v61 = vpack.c.bf16 %v1187_v6, %v1186_v59 }
0x107a   :  { %v868_v9 = vrot.slane %v3634_v8, 2 }
0x107c   :  { %869 = vrot.lane.b32.xlu1 %v868_v9, %s3362_s26  ;;  %v2561_v9 = vld [vmem:[#allocation10] ss:$0 sm:$0xff] }
0x10ee   :  { %v870_v12 = vpop.permute.xlu1 %869 }
0x10ef   :  { %2779 = vmatmul.mubr.msk.f32.vlgmr.msra.gmra.mrb[6].mxu1 %vm214_vm4, %v870_v12 }
0x11c2   :  { %v939_v13 = vpop.f32.mrb[6].mxu1 }
0x11c3   :  { %v944_v15 = vrot.slane %v939_v13, 4  ;;  %v2780_v17 = vpop.f32.mrb[7].mxu1 }
0x11c5   :  { %v946_v18 = vadd.f32 %v944_v15, %v3556_v14 }
0x11c7   :  { %3123 = vtanh.f32 %v946_v18  ;;  %v2558_v20 = vmul.f32 -1.442695, %v946_v18 }
0x11c9   :  { %3125 = vpow2.f32 %v2558_v20 }
0x11d1   :  { %v3124_v19 = vpop.eup %3123 }
0x11d2   :  { %959 = vrot.lane.b32.xlu0 %v3124_v19, %s3361_s3 }
0x11d3   :  { %v3126_v21 = vpop.eup %3125 }
0x11d4   :  { %v950_v22 = vadd.f32 1.0, %v3126_v21 }
0x11d6   :  { %3127 = vrcp.f32 %v950_v22 }
0x11e0   :  { %v3128_v23 = vpop.eup %3127 }
0x11e1   :  { %v957_v27 = vmul.f32 %v3128_v23, %v955_v26 }
0x1244   :  { %v960_v24 = vpop.permute.xlu0 %959 }
0x1245   :  { %v962_v25 = vmul.f32 %v3128_v23, %v960_v24 }
0x1247   :  { %964 = vrot.lane.b32.xlu1 %v962_v25, %s3361_s3 }
0x12b9   :  { %v965_v28 = vpop.permute.xlu1 %964 }
0x12ba   :  { %v967_v29 = vadd.f32 %v965_v28, %v957_v27 }
0x12bc   :  { %3129 = vtanh.f32 %v967_v29 }
0x12c6   :  { %v3130_v30 = vpop.eup %3129 }
0x12c7   :  { %970 = vrot.lane.b32.xlu0 %v3130_v30, %s3361_s3 }
0x1339   :  { %v971_v16 = vpop.permute.xlu0 %970 }
0x133a   :  { %v973_v31 = vmul.f32 %v3128_v23, %v971_v16 }
0x133c   :  { %v979_v33 = vrot.slane %v973_v31, 4 }
0x133e   :  { %980 = vrot.lane.b32.xlu1 %v979_v33, %s3362_s26 }
0x13b0   :  { %v981_v34 = vpop.permute.xlu1 %980 }
0x13b1   :  { %2790 = vmatmul.mubr.msk.f32.vlgmr.msra.gmra.mrb[8].mxu0 %vm214_vm4, %v981_v34 }
0x13b2   :  { %2811 = vmatprep.mubr.msk.f32.mxu0 %vm3359_vm0, %v3360_v2 }
0x1484   :  { %v1050_v35 = vpop.f32.mrb[8].mxu0 }
0x1485   :  { %v1055_v36 = vrot.slane %v1050_v35, 2  ;;  %v2791_v37 = vpop.f32.mrb[9].mxu0 }
0x1487   :  { %v1057_v38 = vadd.f32 %v1055_v36, %v3556_v14  ;;  %v1066_v14 = vrot.slane %v967_v29, 6 }
0x1489   :  { %3131 = vtanh.f32 %v1057_v38  ;;  %v2560_v40 = vmul.f32 -1.442695, %v1057_v38 }
0x148b   :  { %3133 = vpow2.f32 %v2560_v40 }
0x1493   :  { %v3132_v39 = vpop.eup %3131 }
0x1494   :  { %1070 = vrot.lane.b32.xlu0 %v3132_v39, %s3361_s3 }
0x1495   :  { %v3134_v41 = vpop.eup %3133 }
0x1496   :  { %v1061_v42 = vadd.f32 1.0, %v3134_v41 }
0x1498   :  { %3135 = vrcp.f32 %v1061_v42 }
0x14a2   :  { %v3136_v43 = vpop.eup %3135 }
0x14a3   :  { %v1068_v46 = vmul.f32 %v3136_v43, %v1066_v14 }
0x1506   :  { %v1071_v44 = vpop.permute.xlu0 %1070 }
0x1507   :  { %v1073_v45 = vmul.f32 %v3136_v43, %v1071_v44 }
0x1509   :  { %1075 = vrot.lane.b32.xlu1 %v1073_v45, %s3361_s3 }
0x150d   :  { %423 = vrot.lane.b32.xlu1 %v3577_v51, %s3362_s26 }
0x1511   :  { %647 = vrot.lane.b32.xlu1 %v3607_v32, %s3362_s26  ;;  %v1092_v32 = vld [vmem:[%s3900_s5] sm:$0xff]  ;;  %s2531_s5 = sshll.u32 %s3364_s25, 4  ;;  %s2532_s5 = int_to_ptr.vmem [resolvable:$true] %s2531_s5 }
0x1512   :  { %v2982_v54 = vpack.c.bf16 %v1093_v53, %v1092_v32  ;;  %p3328_p13 = scmp.lt.s32.totalorder %s2532_s5, %s2532_s5 }
0x1514   :  { %2983 = vmatprep.subr.bf16.mxu1 %v2982_v54 }
0x1515   :  { %975 = vrot.lane.b32.xlu1 %v973_v31, %s3362_s26  ;;  %2985 = vmatpush3.bf16.msra.mxu1 %v2982_v54 }
0x1516   :  { %2987 = vmatprep.subr.bf16.mxu1 %v2986_v60 }
0x1519   :  { %2989 = vmatpush3.bf16.msra.mxu1 %v2986_v60 }
0x151a   :  { %2996 = vmatprep.subr.bf16.mxu1 %v3358_v1 }
0x157b   :  { %v1076_v47 = vpop.permute.xlu1 %1075 }
0x157c   :  { %v1078_v48 = vadd.f32 %v1076_v47, %v1068_v46 }
0x157e   :  { %3137 = vtanh.f32 %v1078_v48 }
0x157f   :  { %v424_v49 = vpop.permute.xlu1 %423 }
0x1580   :  { %427 = vst.msk [vmem:[#allocation2] sm:$0xc] %vm426_vm5, %v424_v49 }
0x1583   :  { %v648_v50 = vpop.permute.xlu1 %647 }
0x1584   :  { %651 = vst.msk [vmem:[#allocation2] sm:$0xc0] %vm650_vm6, %v648_v50 }
0x1587   :  { %v976_v51 = vpop.permute.xlu1 %975 }
0x1588   :  { %v3138_v52 = vpop.eup %3137  ;;  %978 = vst.msk [vmem:[#allocation2 + $0x8] sm:$0x30] %vm538_vm7, %v976_v51 }
0x1589   :  { %1081 = vrot.lane.b32.xlu0 %v3138_v52, %s3361_s3 }
0x158d   :  { %535 = vrot.lane.b32.xlu0 %v3592_v10, %s3362_s26  ;;  %v1185_v10 = vld [vmem:[%s3901_s6 + $0x8] sm:$0xff] }
0x158e   :  { %v3678_v57 = vpack.c.bf16 %v1185_v10, %v1184_v55 }
0x1590   :  { %2992 = vmatpush3.bf16.msra.mxu0 %v3678_v57 }
0x1591   :  { %864 = vrot.lane.b32.xlu0 %v3634_v8, %s3362_s26  ;;  %2993 = vmatprep.subr.bf16.mxu0 %v3358_v1 }
0x1594   :  { %2995 = vmatpush3.bf16.msra.mxu0 %v3690_v61 }
0x1595   :  { %3002 = vmatprep.subr.bf16.mxu0 %v3358_v1 }
0x1597   :  { %2812 = vmatmul.mubr.f32.vlgmr.msra.gmra.mrb[10].mxu0 %v3360_v2 }
0x1598   :  { %3004 = vmatpush3.bf16.msra.mxu0 %v3678_v57  ;;  %2833 = vmatprep.mubr.msk.f32.mxu0 %vm3359_vm0, %v3360_v2 }
0x1599   :  { %3005 = vmatprep.subr.bf16.mxu0 %v3358_v1 }
0x159c   :  { %3007 = vmatpush3.bf16.msra.mxu0 %v3690_v61 }
0x159d   :  { %3014 = vmatprep.subr.bf16.mxu0 %v3358_v1 }
0x15fb   :  { %v1082_v62 = vpop.permute.xlu0 %1081 }
0x15fc   :  { %v1084_v63 = vmul.f32 %v3136_v43, %v1082_v62 }
0x15fe   :  { %1086 = vrot.lane.b32.xlu0 %v1084_v63, %s3362_s26 }
0x15ff   :  { %v536_v11 = vpop.permute.xlu0 %535 }
0x1600   :  { %539 = vst.msk [vmem:[#allocation2] sm:$0x30] %vm538_vm7, %v536_v11 }
0x1603   :  { %v865_v0 = vpop.permute.xlu0 %864 }
0x1604   :  { %867 = vst.msk [vmem:[#allocation2 + $0x8] sm:$0xc] %vm426_vm5, %v865_v0 }
0x1607   :  { %v1090_v3 = vld [vmem:[#allocation2] sm:$0xff] }
0x1608   :  { %2800 = vmatprep.mubr.msk.f32.mxu1 %vm214_vm4, %v1090_v3 }
0x166a   :  { %v1254_v7 = vpop.f32.mrb[10].mxu0 }
0x166b   :  { %v2813_v8 = vpop.f32.mrb[11].mxu0 }
0x1670   :  { %v1087_v4 = vpop.permute.xlu0 %1086 }
0x1671   :  { %1089 = vst.msk [vmem:[#allocation2 + $0x8] sm:$0xc0] %vm650_vm6, %v1087_v4 }
0x1678   :  { %v1091_v5 = vld [vmem:[#allocation2 + $0x8] sm:$0xff] }
0x1679   :  { %2801 = vmatmul.mubr.msk.f32.vlgmr.msra.gmra.mrb[8].mxu1 %vm214_vm4, %v1091_v5 }
0x167a   :  { %2998 = vmatpush3.bf16.msra.mxu1 %v3678_v57  ;;  %2822 = vmatprep.mubr.msk.f32.mxu1 %vm3359_vm0, %v3360_v2 }
0x167b   :  { %2999 = vmatprep.subr.bf16.mxu1 %v3358_v1 }
0x167e   :  { %3001 = vmatpush3.bf16.msra.mxu1 %v3690_v61 }
0x167f   :  { %3008 = vmatprep.subr.bf16.mxu1 %v3358_v1 }
0x174c   :  { %v2802_v12 = vpop.f32.mrb[8].mxu1 }
0x174d   :  { %v3715_v13 = vadd.f32 %v2802_v12, %v2561_v9  ;;  %v1175_v15 = vpop.f32.mrb[9].mxu1 }
0x174e   :  { %v3717_v17 = vadd.f32 %v2561_v9, %v1175_v15 }
0x1750   :  { %v1258_v18 = vadd.f32 %v1254_v7, %v3717_v17 }
0x1752   :  { %3139 = vtanh.f32 %v1258_v18  ;;  %v2564_v20 = vmul.f32 -1.442695, %v1258_v18 }
0x1754   :  { %3141 = vpow2.f32 %v2564_v20 }
0x175c   :  { %v3140_v19 = vpop.eup %3139 }
0x175d   :  { %1268 = vrot.lane.b32.xlu1 %v3140_v19, %s3361_s3 }
0x175e   :  { %v3142_v21 = vpop.eup %3141 }
0x175f   :  { %v1262_v22 = vadd.f32 1.0, %v3142_v21 }
0x1761   :  { %3143 = vrcp.f32 %v1262_v22 }
0x176b   :  { %v3144_v23 = vpop.eup %3143 }
0x176c   :  { %v1266_v26 = vmul.f32 0.0, %v3144_v23 }
0x17cf   :  { %v1269_v24 = vpop.permute.xlu1 %1268 }
0x17d0   :  { %v1271_v25 = vmul.f32 %v3144_v23, %v1269_v24 }
0x17d2   :  { %1273 = vrot.lane.b32.xlu0 %v1271_v25, %s3361_s3 }
0x1844   :  { %v1274_v27 = vpop.permute.xlu0 %1273 }
0x1845   :  { %v1276_v28 = vadd.f32 %v1274_v27, %v1266_v26 }
0x1847   :  { %3145 = vtanh.f32 %v1276_v28  ;;  %v1372_v44 = vrot.slane %v1276_v28, 6 }
0x1851   :  { %v3146_v29 = vpop.eup %3145 }
0x1852   :  { %1279 = vrot.lane.b32.xlu1 %v3146_v29, %s3361_s3 }
0x18c4   :  { %v1280_v30 = vpop.permute.xlu1 %1279 }
0x18c5   :  { %v1282_v16 = vmul.f32 %v3144_v23, %v1280_v30 }
0x18c7   :  { %1284 = vrot.lane.b32.xlu0 %v1282_v16, %s3362_s26 }
0x1939   :  { %v1285_v31 = vpop.permute.xlu0 %1284 }
0x193a   :  { %1287 = vst.msk [vmem:[#allocation3] sm:$0x3] %vm317_vm3, %v1285_v31  ;;  %2823 = vmatmul.mubr.msk.f32.vlgmr.msra.gmra.mrb[10].mxu1 %vm214_vm4, %v1285_v31 }
0x193b   :  { %3010 = vmatpush3.bf16.msra.mxu1 %v3678_v57  ;;  %2844 = vmatprep.mubr.msk.f32.mxu1 %vm3359_vm0, %v3360_v2 }
0x193c   :  { %3011 = vmatprep.subr.bf16.mxu1 %v3358_v1 }
0x193f   :  { %3013 = vmatpush3.bf16.msra.mxu1 %v3690_v61 }
0x1940   :  { %3020 = vmatprep.subr.bf16.mxu1 %v3358_v1 }
0x1a0d   :  { %v1356_v33 = vpop.f32.mrb[10].mxu1 }
0x1a0e   :  { %v1361_v34 = vrot.slane %v1356_v33, 6  ;;  %v2824_v35 = vpop.f32.mrb[11].mxu1 }
0x1a10   :  { %v1363_v36 = vadd.f32 %v1361_v34, %v3717_v17 }
0x1a12   :  { %3147 = vtanh.f32 %v1363_v36  ;;  %v2566_v38 = vmul.f32 -1.442695, %v1363_v36 }
0x1a14   :  { %3149 = vpow2.f32 %v2566_v38 }
0x1a1c   :  { %v3148_v37 = vpop.eup %3147 }
0x1a1d   :  { %1376 = vrot.lane.b32.xlu1 %v3148_v37, %s3361_s3 }
0x1a1e   :  { %v3150_v39 = vpop.eup %3149 }
0x1a1f   :  { %v1367_v40 = vadd.f32 1.0, %v3150_v39 }
0x1a21   :  { %3151 = vrcp.f32 %v1367_v40 }
0x1a2b   :  { %v3152_v41 = vpop.eup %3151 }
0x1a2c   :  { %v1374_v45 = vmul.f32 %v3152_v41, %v1372_v44 }
0x1a8f   :  { %v1377_v42 = vpop.permute.xlu1 %1376 }
0x1a90   :  { %v1379_v43 = vmul.f32 %v3152_v41, %v1377_v42 }
0x1a92   :  { %1381 = vrot.lane.b32.xlu0 %v1379_v43, %s3361_s3 }
0x1b04   :  { %v1382_v14 = vpop.permute.xlu0 %1381 }
0x1b05   :  { %v1384_v46 = vadd.f32 %v1382_v14, %v1374_v45 }
0x1b07   :  { %3153 = vtanh.f32 %v1384_v46  ;;  %v1483_v62 = vrot.slane %v1384_v46, 6 }
0x1b11   :  { %v3154_v47 = vpop.eup %3153 }
0x1b12   :  { %1387 = vrot.lane.b32.xlu1 %v3154_v47, %s3361_s3 }
0x1b84   :  { %v1388_v48 = vpop.permute.xlu1 %1387 }
0x1b85   :  { %v3736_v49 = vmul.f32 %v3152_v41, %v1388_v48 }
0x1b87   :  { %v1396_v50 = vrot.slane %v3736_v49, 2 }
0x1b89   :  { %1397 = vrot.lane.b32.xlu0 %v1396_v50, %s3362_s26 }
0x1bfb   :  { %v1398_v51 = vpop.permute.xlu0 %1397 }
0x1bfc   :  { %2834 = vmatmul.mubr.msk.f32.vlgmr.msra.gmra.mrb[12].mxu0 %vm214_vm4, %v1398_v51 }
0x1bfd   :  { %3016 = vmatpush3.bf16.msra.mxu0 %v3678_v57  ;;  %2855 = vmatprep.mubr.msk.f32.mxu0 %vm3359_vm0, %v3360_v2 }
0x1bfe   :  { %3017 = vmatprep.subr.bf16.mxu0 %v3358_v1 }
0x1c01   :  { %3019 = vmatpush3.bf16.msra.mxu0 %v3690_v61 }
0x1c02   :  { %3026 = vmatprep.subr.bf16.mxu0 %v3358_v1 }
0x1ccf   :  { %v1467_v52 = vpop.f32.mrb[12].mxu0 }
0x1cd0   :  { %v1472_v32 = vrot.slane %v1467_v52, 4  ;;  %v2835_v53 = vpop.f32.mrb[13].mxu0 }
0x1cd2   :  { %v1474_v54 = vadd.f32 %v1472_v32, %v3717_v17 }
0x1cd4   :  { %3155 = vtanh.f32 %v1474_v54  ;;  %v2568_v10 = vmul.f32 -1.442695, %v1474_v54 }
0x1cd6   :  { %3157 = vpow2.f32 %v2568_v10 }
0x1cde   :  { %v3156_v55 = vpop.eup %3155 }
0x1cdf   :  { %1487 = vrot.lane.b32.xlu1 %v3156_v55, %s3361_s3 }
0x1ce0   :  { %v3158_v56 = vpop.eup %3157 }
0x1ce1   :  { %v1478_v58 = vadd.f32 1.0, %v3158_v56 }
0x1ce3   :  { %3159 = vrcp.f32 %v1478_v58 }
0x1ced   :  { %v3160_v59 = vpop.eup %3159 }
0x1cee   :  { %v1485_v63 = vmul.f32 %v3160_v59, %v1483_v62 }
0x1d51   :  { %v1488_v6 = vpop.permute.xlu1 %1487 }
0x1d52   :  { %v1490_v60 = vmul.f32 %v3160_v59, %v1488_v6 }
0x1d54   :  { %1492 = vrot.lane.b32.xlu0 %v1490_v60, %s3361_s3 }
0x1dc6   :  { %v1493_v11 = vpop.permute.xlu0 %1492 }
0x1dc7   :  { %v1495_v0 = vadd.f32 %v1493_v11, %v1485_v63 }
0x1dc9   :  { %3161 = vtanh.f32 %v1495_v0  ;;  %v1594_v26 = vrot.slane %v1495_v0, 6 }
0x1dd3   :  { %v3162_v3 = vpop.eup %3161 }
0x1dd4   :  { %1498 = vrot.lane.b32.xlu1 %v3162_v3, %s3361_s3 }
0x1e46   :  { %v1499_v4 = vpop.permute.xlu1 %1498 }
0x1e47   :  { %v3751_v5 = vmul.f32 %v3160_v59, %v1499_v4 }
0x1e49   :  { %v1507_v7 = vrot.slane %v3751_v5, 4 }
0x1e4b   :  { %1508 = vrot.lane.b32.xlu0 %v1507_v7, %s3362_s26 }
0x1ebd   :  { %v1509_v8 = vpop.permute.xlu0 %1508 }
0x1ebe   :  { %2845 = vmatmul.mubr.msk.f32.vlgmr.msra.gmra.mrb[12].mxu1 %vm214_vm4, %v1509_v8 }
0x1ebf   :  { %3022 = vmatpush3.bf16.msra.mxu1 %v3678_v57  ;;  %2866 = vmatprep.mubr.msk.f32.mxu1 %vm3359_vm0, %v3360_v2 }
0x1ec0   :  { %3023 = vmatprep.subr.bf16.mxu1 %v3358_v1 }
0x1ec3   :  { %3025 = vmatpush3.bf16.msra.mxu1 %v3690_v61 }
0x1ec4   :  { %3032 = vmatprep.subr.bf16.mxu1 %v3358_v1 }
0x1f91   :  { %v1578_v9 = vpop.f32.mrb[12].mxu1 }
0x1f92   :  { %v1583_v12 = vrot.slane %v1578_v9, 2  ;;  %v2846_v15 = vpop.f32.mrb[13].mxu1 }
0x1f94   :  { %v1585_v18 = vadd.f32 %v1583_v12, %v3717_v17 }
0x1f96   :  { %3163 = vtanh.f32 %v1585_v18  ;;  %v2570_v20 = vmul.f32 -1.442695, %v1585_v18 }
0x1f98   :  { %3165 = vpow2.f32 %v2570_v20 }
0x1fa0   :  { %v3164_v19 = vpop.eup %3163 }
0x1fa1   :  { %1598 = vrot.lane.b32.xlu1 %v3164_v19, %s3361_s3 }
0x1fa2   :  { %v3166_v21 = vpop.eup %3165 }
0x1fa3   :  { %v1589_v22 = vadd.f32 1.0, %v3166_v21 }
0x1fa5   :  { %3167 = vrcp.f32 %v1589_v22 }
0x1faf   :  { %v3168_v23 = vpop.eup %3167 }
0x1fb0   :  { %v1596_v27 = vmul.f32 %v3168_v23, %v1594_v26 }
0x2013   :  { %v1599_v24 = vpop.permute.xlu1 %1598 }
0x2014   :  { %v1601_v25 = vmul.f32 %v3168_v23, %v1599_v24 }
0x2016   :  { %1603 = vrot.lane.b32.xlu0 %v1601_v25, %s3361_s3 }
0x2088   :  { %v1604_v28 = vpop.permute.xlu0 %1603 }
0x2089   :  { %v1606_v29 = vadd.f32 %v1604_v28, %v1596_v27 }
0x208b   :  { %3169 = vtanh.f32 %v1606_v29  ;;  %v1702_v44 = vrot.slane %v1606_v29, 6 }
0x2095   :  { %v3170_v17 = vpop.eup %3169 }
0x2096   :  { %1609 = vrot.lane.b32.xlu1 %v3170_v17, %s3361_s3 }
0x2108   :  { %v1610_v30 = vpop.permute.xlu1 %1609 }
0x2109   :  { %v3766_v16 = vmul.f32 %v3168_v23, %v1610_v30 }
0x210b   :  { %v1618_v31 = vrot.slane %v3766_v16, 6 }
0x210d   :  { %1619 = vrot.lane.b32.xlu0 %v1618_v31, %s3362_s26 }
0x217f   :  { %v1620_v33 = vpop.permute.xlu0 %1619 }
0x2180   :  { %2856 = vmatmul.mubr.msk.f32.vlgmr.msra.gmra.mrb[14].mxu0 %vm214_vm4, %v1620_v33 }
0x2181   :  { %3028 = vmatpush3.bf16.msra.mxu0 %v3678_v57  ;;  %2877 = vmatprep.mubr.msk.f32.mxu0 %vm3359_vm0, %v3360_v2 }
0x2182   :  { %3029 = vmatprep.subr.bf16.mxu0 %v3358_v1 }
0x2185   :  { %3031 = vmatpush3.bf16.msra.mxu0 %v3690_v61 }
0x2253   :  { %v1689_v34 = vpop.f32.mrb[14].mxu0 }
0x2254   :  { %v1693_v35 = vadd.f32 %v1689_v34, %v3715_v13  ;;  %v2857_v36 = vpop.f32.mrb[15].mxu0 }
0x2256   :  { %3171 = vtanh.f32 %v1693_v35  ;;  %v2572_v38 = vmul.f32 -1.442695, %v1693_v35 }
0x2258   :  { %3173 = vpow2.f32 %v2572_v38 }
0x2260   :  { %v3172_v37 = vpop.eup %3171 }
0x2261   :  { %1706 = vrot.lane.b32.xlu1 %v3172_v37, %s3361_s3 }
0x2262   :  { %v3174_v39 = vpop.eup %3173 }
0x2263   :  { %v1697_v40 = vadd.f32 1.0, %v3174_v39 }
0x2265   :  { %3175 = vrcp.f32 %v1697_v40 }
0x226f   :  { %v3176_v41 = vpop.eup %3175 }
0x2270   :  { %v1704_v45 = vmul.f32 %v3176_v41, %v1702_v44 }
0x22d3   :  { %v1707_v42 = vpop.permute.xlu1 %1706 }
0x22d4   :  { %v1709_v43 = vmul.f32 %v3176_v41, %v1707_v42 }
0x22d6   :  { %1711 = vrot.lane.b32.xlu0 %v1709_v43, %s3361_s3 }
0x2348   :  { %v1712_v14 = vpop.permute.xlu0 %1711 }
0x2349   :  { %v1714_v46 = vadd.f32 %v1712_v14, %v1704_v45 }
0x234b   :  { %3177 = vtanh.f32 %v1714_v46 }
0x2355   :  { %v3178_v47 = vpop.eup %3177 }
0x2356   :  { %1717 = vrot.lane.b32.xlu1 %v3178_v47, %s3361_s3 }
0x23c8   :  { %v1718_v48 = vpop.permute.xlu1 %1717 }
0x23c9   :  { %v1720_v50 = vmul.f32 %v3176_v41, %v1718_v48 }
0x23cb   :  { %1722 = vrot.lane.b32.xlu0 %v1720_v50, %s3362_s26 }
0x243d   :  { %v1723_v51 = vpop.permute.xlu0 %1722 }
0x243e   :  { %1725 = vst.msk [vmem:[#allocation3 + $0x8] sm:$0x3] %vm317_vm3, %v1723_v51  ;;  %2867 = vmatmul.mubr.msk.f32.vlgmr.msra.gmra.mrb[14].mxu1 %vm214_vm4, %v1723_v51 }
0x243f   :  { %3034 = vmatpush3.bf16.msra.mxu1 %v3678_v57  ;;  %2888 = vmatprep.mubr.msk.f32.mxu1 %vm3359_vm0, %v3360_v2 }
0x2440   :  { %3035 = vmatprep.subr.bf16.mxu1 %v3358_v1 }
0x2443   :  { %3037 = vmatpush3.bf16.msra.mxu1 %v3690_v61  ;;  %v1810_v61 = vrot.slane %v1714_v46, 6 }
0x2444   :  { %3046 = vmatprep.subr.bf16.mxu1 %v3358_v1 }
0x2511   :  { %v1794_v52 = vpop.f32.mrb[14].mxu1 }
0x2512   :  { %v1799_v32 = vrot.slane %v1794_v52, 6  ;;  %v2868_v53 = vpop.f32.mrb[15].mxu1 }
0x2514   :  { %v1801_v54 = vadd.f32 %v1799_v32, %v3715_v13  ;;  %v2060_v32 = vld [vmem:[%s3903_s8 + $0x10] sm:$0xff] }
0x2516   :  { %3179 = vtanh.f32 %v1801_v54  ;;  %v2574_v10 = vmul.f32 -1.442695, %v1801_v54 }
0x2518   :  { %3181 = vpow2.f32 %v2574_v10 }
0x2520   :  { %v3180_v55 = vpop.eup %3179 }
0x2521   :  { %1814 = vrot.lane.b32.xlu1 %v3180_v55, %s3361_s3 }
0x2522   :  { %v3182_v57 = vpop.eup %3181 }
0x2523   :  { %v1805_v56 = vadd.f32 1.0, %v3182_v57 }
0x2525   :  { %3183 = vrcp.f32 %v1805_v56 }
0x252f   :  { %v3184_v58 = vpop.eup %3183 }
0x2530   :  { %v1812_v60 = vmul.f32 %v3184_v58, %v1810_v61 }
0x2593   :  { %v1815_v59 = vpop.permute.xlu1 %1814 }
0x2594   :  { %v1817_v6 = vmul.f32 %v3184_v58, %v1815_v59 }
0x2596   :  { %1819 = vrot.lane.b32.xlu0 %v1817_v6, %s3361_s3  ;;  %v2579_v6 = vld [vmem:[#allocation11] ss:$0 sm:$0xff] }
0x2608   :  { %v1820_v62 = vpop.permute.xlu0 %1819 }
0x2609   :  { %v1822_v63 = vadd.f32 %v1820_v62, %v1812_v60 }
0x260b   :  { %3185 = vtanh.f32 %v1822_v63  ;;  %v1921_v25 = vrot.slane %v1822_v63, 6 }
0x2615   :  { %v3186_v11 = vpop.eup %3185 }
0x2616   :  { %1825 = vrot.lane.b32.xlu1 %v3186_v11, %s3361_s3  ;;  %v2582_v11 = vld [vmem:[#allocation13] ss:$0 sm:$0xff] }
0x2688   :  { %v1826_v0 = vpop.permute.xlu1 %1825 }
0x2689   :  { %v3793_v3 = vmul.f32 %v3184_v58, %v1826_v0 }
0x268b   :  { %v1834_v4 = vrot.slane %v3793_v3, 2 }
0x268d   :  { %1835 = vrot.lane.b32.xlu0 %v1834_v4, %s3362_s26 }
0x26ff   :  { %v1836_v7 = vpop.permute.xlu0 %1835 }
0x2700   :  { %2878 = vmatmul.mubr.msk.f32.vlgmr.msra.gmra.mrb[16].mxu0 %vm214_vm4, %v1836_v7 }
0x27d3   :  { %v1905_v8 = vpop.f32.mrb[16].mxu0 }
0x27d4   :  { %v1910_v9 = vrot.slane %v1905_v8, 4  ;;  %v2879_v12 = vpop.f32.mrb[17].mxu0 }
0x27d5   :  { %v3363_v12 = vmov 0  }
0x27d6   :  { %v1912_v15 = vadd.f32 %v1910_v9, %v3715_v13  ;;  %3074 = vset.pattern.permute.xlu1 %v3363_v12  ;;  %3073 = vset.pattern.permute.xlu0 %v3363_v12 }
0x27d8   :  { %3187 = vtanh.f32 %v1912_v15  ;;  %v2576_v19 = vmul.f32 -1.442695, %v1912_v15  ;;  %v2583_v15 = vld [vmem:[#allocation4] ss:$0 sm:$0xff] }
0x27da   :  { %3189 = vpow2.f32 %v2576_v19 }
0x27e2   :  { %v3188_v18 = vpop.eup %3187 }
0x27e3   :  { %1925 = vrot.lane.b32.xlu1 %v3188_v18, %s3361_s3 }
0x27e4   :  { %v3190_v20 = vpop.eup %3189 }
0x27e5   :  { %v1916_v21 = vadd.f32 1.0, %v3190_v20 }
0x27e7   :  { %3191 = vrcp.f32 %v1916_v21 }
0x27f1   :  { %v3192_v22 = vpop.eup %3191 }
0x27f2   :  { %v1923_v26 = vmul.f32 %v3192_v22, %v1921_v25 }
0x2855   :  { %v1926_v23 = vpop.permute.xlu1 %1925 }
0x2856   :  { %v1928_v24 = vmul.f32 %v3192_v22, %v1926_v23 }
0x2858   :  { %1930 = vrot.lane.b32.xlu0 %v1928_v24, %s3361_s3 }
0x28ca   :  { %v1931_v27 = vpop.permute.xlu0 %1930 }
0x28cb   :  { %v1933_v28 = vadd.f32 %v1931_v27, %v1923_v26 }
0x28cd   :  { %3193 = vtanh.f32 %v1933_v28 }
0x28d7   :  { %v3194_v29 = vpop.eup %3193 }
0x28d8   :  { %1936 = vrot.lane.b32.xlu1 %v3194_v29, %s3361_s3 }
0x294a   :  { %v1937_v17 = vpop.permute.xlu1 %1936 }
0x294b   :  { %v1939_v30 = vmul.f32 %v3192_v22, %v1937_v17 }
0x294d   :  { %v1945_v31 = vrot.slane %v1939_v30, 4 }
0x294f   :  { %1946 = vrot.lane.b32.xlu0 %v1945_v31, %s3362_s26 }
0x29c1   :  { %v1947_v33 = vpop.permute.xlu0 %1946 }
0x29c2   :  { %2889 = vmatmul.mubr.msk.f32.vlgmr.msra.gmra.mrb[16].mxu1 %vm214_vm4, %v1947_v33 }
0x29c3   :  { %2906 = vmatprep.mubr.msk.f32.mxu1 %vm3359_vm0, %v3360_v2 }
0x2a95   :  { %v2016_v34 = vpop.f32.mrb[16].mxu1 }
0x2a96   :  { %v2021_v35 = vrot.slane %v2016_v34, 2  ;;  %v2890_v36 = vpop.f32.mrb[17].mxu1 }
0x2a98   :  { %v2023_v37 = vadd.f32 %v2021_v35, %v3715_v13  ;;  %v2032_v13 = vrot.slane %v1933_v28, 6 }
0x2a9a   :  { %3195 = vtanh.f32 %v2023_v37  ;;  %v2578_v39 = vmul.f32 -1.442695, %v2023_v37 }
0x2a9c   :  { %3197 = vpow2.f32 %v2578_v39 }
0x2aa4   :  { %v3196_v38 = vpop.eup %3195 }
0x2aa5   :  { %2036 = vrot.lane.b32.xlu1 %v3196_v38, %s3361_s3  ;;  %v2192_v38 = vld [vmem:[%s3896_s1] sm:$0x3] }
0x2aa6   :  { %v3198_v40 = vpop.eup %3197 }
0x2aa7   :  { %v2027_v41 = vadd.f32 1.0, %v3198_v40 }
0x2aa9   :  { %3199 = vrcp.f32 %v2027_v41 }
0x2ab3   :  { %v3200_v42 = vpop.eup %3199 }
0x2ab4   :  { %v2034_v45 = vmul.f32 %v3200_v42, %v2032_v13 }
0x2b17   :  { %v2037_v43 = vpop.permute.xlu1 %2036 }
0x2b18   :  { %v2039_v44 = vmul.f32 %v3200_v42, %v2037_v43  ;;  %v2356_v43 = vld [vmem:[%s3907_s12] sm:$0xff] }
0x2b1a   :  { %2041 = vrot.lane.b32.xlu0 %v2039_v44, %s3361_s3  ;;  %v2357_v44 = vld [vmem:[%s3907_s12 + $0x8] sm:$0xff] }
0x2b1e   :  { %1392 = vrot.lane.b32.xlu0 %v3736_v49, %s3362_s26  ;;  %v2058_v49 = vld [vmem:[%s3903_s8] sm:$0xff] }
0x2b22   :  { %1614 = vrot.lane.b32.xlu0 %v3766_v16, %s3362_s26  ;;  %v2059_v16 = vld [vmem:[%s3903_s8 + $0x8] sm:$0xff] }
0x2b23   :  { %v3038_v52 = vpack.c.bf16 %v2059_v16, %v2058_v49 }
0x2b25   :  { %3039 = vmatprep.subr.bf16.mxu0 %v3038_v52 }
0x2b26   :  { %1941 = vrot.lane.b32.xlu0 %v1939_v30, %s3362_s26  ;;  %3041 = vmatpush3.bf16.msra.mxu0 %v3038_v52 }
0x2b8c   :  { %v2042_v14 = vpop.permute.xlu0 %2041 }
0x2b8d   :  { %v2044_v46 = vadd.f32 %v2042_v14, %v2034_v45  ;;  %v3053_v45 = vpack.c.bf16 %v2357_v44, %v2356_v43 }
0x2b8f   :  { %3201 = vtanh.f32 %v2044_v46 }
0x2b90   :  { %v1393_v47 = vpop.permute.xlu0 %1392 }
0x2b91   :  { %1395 = vst.msk [vmem:[#allocation3] sm:$0xc] %vm426_vm5, %v1393_v47  ;;  %v2358_v47 = vld [vmem:[%s3907_s12 + $0x10] sm:$0xff] }
0x2b94   :  { %v1615_v48 = vpop.permute.xlu0 %1614 }
0x2b95   :  { %1617 = vst.msk [vmem:[#allocation3] sm:$0xc0] %vm650_vm6, %v1615_v48  ;;  %v2359_v48 = vld [vmem:[%s3907_s12 + $0x18] sm:$0xff] }
0x2b98   :  { %v1942_v50 = vpop.permute.xlu0 %1941 }
0x2b99   :  { %v3202_v51 = vpop.eup %3201  ;;  %1944 = vst.msk [vmem:[#allocation3 + $0x8] sm:$0x30] %vm538_vm7, %v1942_v50  ;;  %v3056_v50 = vpack.c.bf16 %v2359_v48, %v2358_v47 }
0x2b9a   :  { %2047 = vrot.lane.b32.xlu1 %v3202_v51, %s3361_s3 }
0x2b9e   :  { %1503 = vrot.lane.b32.xlu1 %v3751_v5, %s3362_s26  ;;  %v2061_v5 = vld [vmem:[%s3903_s8 + $0x18] sm:$0xff] }
0x2b9f   :  { %v3042_v53 = vpack.c.bf16 %v2061_v5, %v2060_v32  ;;  %v2442_v32 = vld [vmem:[%s3909_s14 + $0x8] sm:$0xff] }
0x2ba1   :  { %3043 = vmatprep.subr.bf16.mxu0 %v3042_v53 }
0x2ba2   :  { %1830 = vrot.lane.b32.xlu1 %v3793_v3, %s3362_s26  ;;  %3045 = vmatpush3.bf16.msra.mxu0 %v3042_v53  ;;  %v2586_v53 = vld [vmem:[%s3908_s13] ss:$0 sm:$0xff] }
0x2ba3   :  { %3049 = vmatprep.subr.bf16.mxu0 %v3358_v1 }
0x2c0c   :  { %v2048_v54 = vpop.permute.xlu1 %2047 }
0x2c0d   :  { %v2050_v55 = vmul.f32 %v3200_v42, %v2048_v54 }
0x2c0f   :  { %2052 = vrot.lane.b32.xlu1 %v2050_v55, %s3362_s26 }
0x2c10   :  { %v1504_v10 = vpop.permute.xlu1 %1503 }
0x2c11   :  { %1506 = vst.msk [vmem:[#allocation3] sm:$0x30] %vm538_vm7, %v1504_v10 }
0x2c14   :  { %v1831_v57 = vpop.permute.xlu1 %1830 }
0x2c15   :  { %1833 = vst.msk [vmem:[#allocation3 + $0x8] sm:$0xc] %vm426_vm5, %v1831_v57 }
0x2c18   :  { %v2056_v56 = vld [vmem:[#allocation3] sm:$0xff] }
0x2c19   :  { %2899 = vmatprep.mubr.msk.f32.mxu0 %vm214_vm4, %v2056_v56 }
0x2c81   :  { %v2053_v58 = vpop.permute.xlu1 %2052 }
0x2c82   :  { %2055 = vst.msk [vmem:[#allocation3 + $0x8] sm:$0xc0] %vm650_vm6, %v2053_v58 }
0x2c89   :  { %v2057_v59 = vld [vmem:[#allocation3 + $0x8] sm:$0xff] }
0x2c8a   :  { %2900 = vmatmul.mubr.msk.f32.vlgmr.msra.gmra.mrb[18].mxu0 %vm214_vm4, %v2057_v59 }
0x2c8b   :  { %2913 = vmatprep.mubr.msk.f32.mxu0 %vm3359_vm0, %v3360_v2 }
0x2d5d   :  { %v2901_v61 = vpop.f32.mrb[18].mxu0 }
0x2d5e   :  { %v2147_v60 = vadd.f32 %v2901_v61, %v2579_v6  ;;  %v2141_v62 = vpop.f32.mrb[19].mxu0 }
0x2d5f   :  { %v2142_v63 = vadd.f32 %v2579_v6, %v2141_v62 }
0x2d60   :  { %3203 = vtanh.f32 %v2147_v60 }
0x2d61   :  { %3205 = vtanh.f32 %v2142_v63 }
0x2d6a   :  { %v3204_v0 = vpop.eup %3203 }
0x2d6b   :  { %v3206_v3 = vpop.eup %3205  ;;  %v2160_v4 = vmul.f32 %v3204_v0, %v2582_v11 }
0x2d6c   :  { %v2159_v7 = vmul.f32 %v3206_v3, %v2582_v11 }
0x2d6d   :  { %v2164_v8 = vsel %vm214_vm4, %v2160_v4, 0.0 }
0x2d6e   :  { %2165 = vadd.xlane.f32.xlu1 %v2164_v8  ;;  %v2161_v9 = vsel %vm214_vm4, %v2159_v7, 0.0 }
0x2d6f   :  { %2162 = vadd.xlane.f32.xlu0 %v2161_v9 }
0x2dfb   :  { %v2166_v18 = vpop.xlane.xlu1 %2165 }
0x2dfc   :  { %v2175_v19 = vadd.f32 %v2583_v15, %v2166_v18  ;;  %v2163_v20 = vpop.xlane.xlu0 %2162 }
0x2dfd   :  { %v2174_v21 = vadd.f32 %v2583_v15, %v2163_v20 }
0x2dfe   :  { %v2178_v22 = vsel %vm2176_vm8, %v2175_v19, -inf }
0x2dff   :  { %v2177_v23 = vsel %vm2176_vm8, %v2174_v21, -inf }
0x2e00   :  { %v2179_v24 = vmax.f32 %v2177_v23, %v2178_v22 }
0x2e02   :  { %v2180_v25 = vrot.slane %v2179_v24, 4 }
0x2e04   :  { %v2181_v26 = vmax.f32 %v2179_v24, %v2180_v25 }
0x2e06   :  { %v2182_v27 = vrot.slane %v2181_v26, 2 }
0x2e08   :  { %v2183_v28 = vmax.f32 %v2181_v26, %v2182_v27 }
0x2e0a   :  { %v2184_v29 = vrot.slane %v2183_v28, 1 }
0x2e0c   :  { %v2185_v17 = vmax.f32 %v2183_v28, %v2184_v29 }
0x2e0e   :  { %v2186_v30 = vsub.f32 %v2174_v21, %v2185_v17  ;;  %v2187_v31 = vsub.f32 %v2175_v19, %v2185_v17 }
0x2e10   :  { %v2188_v33 = vmul.f32 1.442695, %v2186_v30  ;;  %v2190_v34 = vmul.f32 1.442695, %v2187_v31 }
0x2e12   :  { %3207 = vpow2.f32 %v2188_v33 }
0x2e13   :  { %3209 = vpow2.f32 %v2190_v34 }
0x2e1c   :  { %v3208_v35 = vpop.eup %3207 }
0x2e1d   :  { %v3210_v36 = vpop.eup %3209  ;;  %2195 = vperm.xlu0 %3073, %v3208_v35  }
0x2e1e   :  { %2200 = vperm.xlu1 %3074, %v3210_v36   ;;  %v3050_v37 = vpack.c.bf16 %v3210_v36, %v3208_v35 }
0x2e20   :  { %3051 = vmatpush3.bf16.msra.mxu0 %v3050_v37 }
0x2e21   :  { %3058 = vmatprep.subr.bf16.mxu0 %v3358_v1 }
0x2e23   :  { %2914 = vmatmul.mubr.msk.f32.vlgmr.msra.gmra.mrb[20].mxu0 %vm2205_vm9, %v2192_v38 }
0x2e24   :  { %2931 = vmatprep.mubr.msk.f32.mxu0 %vm3359_vm0, %v3360_v2 }
0x2e9c   :  { %v2196_v39 = vpop.permute.xlu0 %2195 }
0x2e9d   :  { %v2201_v40 = vpop.permute.xlu1 %2200  ;;  %v2203_v41 = vmul.f32 %v2196_v39, %v2056_v56  ;;  %v2588_v56 = vld [vmem:[%s3910_s15] ss:$0 sm:$0xff] }
0x2e9e   :  { %v2204_v42 = vmul.f32 %v2201_v40, %v2057_v59 }
0x2ea0   :  { %v3047_v13 = vpack.c.bf16 %v2204_v42, %v2203_v41 }
0x2ea2   :  { %3048 = vmatpush3.bf16.msra.mxu1 %v3047_v13 }
0x2ea3   :  { %3052 = vmatprep.subr.bf16.mxu1 %v3358_v1 }
0x2ea5   :  { %2907 = vmatmul.mubr.msk.f32.vlgmr.msra.gmra.mrb[18].mxu1 %vm2205_vm9, %v2192_v38 }
0x2ea6   :  { %3054 = vmatpush3.bf16.msra.mxu1 %v3053_v45  ;;  %2924 = vmatprep.mubr.msk.f32.mxu1 %vm3359_vm0, %v3360_v2 }
0x2ea7   :  { %3055 = vmatprep.subr.bf16.mxu1 %v3358_v1  ;;  %v2441_v1 = vld [vmem:[%s3909_s14] sm:$0xff]  ;;  %s3323_s14 = scalar_lea.vmem %s2532_s5, 32 }
0x2ea8   :  { %v3059_v5 = vpack.c.bf16 %v2442_v32, %v2441_v1  ;;  %p3324_p12 = scmp.ne.s32.totalorder %s2532_s5, %s3323_s14  ;;  %p3329_p0 = scmp.lt.s32.totalorder %s3323_s14, %s3323_s14 }
0x2eaa   :  { %3057 = vmatpush3.bf16.msra.mxu1 %v3056_v50  ;;  %3060 = vmatpush3.bf16.msra.mxu0 %v3059_v5  ;;  %p3330_p1 = por %p3329_p0, %p3328_p13 }
0x2eac   :  { %p3331_p2 = pnand %p3330_p1, %p3324_p12 }
0x2ef6   :  { %v2345_v14 = vpop.f32.mrb[20].mxu0 }
0x2ef7   :  { %3211 = vrcp.f32 %v2345_v14  ;;  %v2915_v46 = vpop.f32.mrb[21].mxu0 }
0x2f01   :  { %v3212_v51 = vpop.eup %3211 }
0x2f02   :  { %2352 = vperm.xlu1 %3074, %v3212_v51  }
0x2f78   :  { %v2275_v49 = vpop.f32.mrb[18].mxu1 }
0x2f79   :  { %v2908_v16 = vpop.f32.mrb[19].mxu1 }
0x2f81   :  { %v2353_v2 = vpop.permute.xlu1 %2352 }
0x2f82   :  { %v2355_v52 = vmul.f32 %v2353_v2, %v2275_v49 }
0x2f84   :  { %2925 = vmatmul.mubr.msk.f32.vlgmr.msra.gmra.mrb[20].mxu1 %vm214_vm4, %v2355_v52 }
0x3057   :  { %v2436_v54 = vpop.f32.mrb[20].mxu1 }
0x3058   :  { %v2437_v55 = vadd.f32 %v2586_v53, %v2436_v54  ;;  %v2926_v10 = vpop.f32.mrb[21].mxu1 }
0x305a   :  { %v2440_v57 = vmax.f32 %v2437_v55, 0.0 }
0x305c   :  { %2932 = vmatmul.mubr.msk.f32.vlgmr.msra.gmra.mrb[22].mxu0 %vm2205_vm9, %v2440_v57 }
0x312f   :  { %v2519_v58 = vpop.f32.mrb[22].mxu0 }
0x3130   :  { %v2520_v59 = vadd.f32 %v2588_v56, %v2519_v58  ;;  %v2933_v6 = vpop.f32.mrb[23].mxu0 }
0x3132   :  { %2524 = vst.msk [vmem:[#allocation14] sm:$0x3] %vm2523_vm10, %v2520_v59 }
0x3133   :  { %3334 = shalt.err (!%p3331_p2)
}
0x3134   :  { %s3335_s27 = scalar_lea.hbm %s3911_s16, 32 }
0x3135   :  { %p3336_p3 = scmp.ne.s32.totalorder %s3911_s16, %s3335_s27  ;;  %p3339_p4 = scmp.lt.u32.totalorder %s3335_s27, %s3911_s16 }
0x3137   :  { %p3341_p5 = pnand %p3339_p4, %p3336_p3 }
0x3139   :  { %3344 = shalt.err (!%p3341_p5)
}
0x313a   :  { %2534 = dma.vmem_to_hbm [thread:$0]  %s2532_s5, 32, %s3911_s16, [#allocation7]  }
0x313b   :  { %3351 = dma.done.wait [#allocation7], 32  }
0x313c   :  { %3352 = vsyncadd [#allocation7], 4294967264 }
0x313d   :  { %2538 = vsyncpa [#allocation6], 1 }
0x313e   :  { %2539 = vsyncpa [#allocation9], 1 }
0x313f   :  { %2540 = vsyncpa [#allocation12], 1 }
0x3140   :  { %2541 = vsyncpa [#allocation7], 1 }

</bundles_post_ra>
